<compile_context>
chip_gen: v7x
topology: tpu7x:2x2x1
jax: 0.10.0
libtpu: 0.0.40
codegen_flags: <defaults>
</compile_context>

<pallas_src>
import functools

import jax
import jax.numpy as jnp
import numpy as np
from jax import lax
from jax.experimental import pallas as pl
from jax.experimental.pallas import tpu as pltpu

EPS = 1e-5  # nn.GroupNorm default eps


def _mish(x):
    # mish(x) = x * tanh(softplus(x)).  With s = 1 + e^x:
    #   tanh(log s) = (s^2 - 1) / (s^2 + 1) = n / (n + 2),   n = e^x * (e^x + 2)
    # -> one exp + one divide instead of exp/log1p/tanh (EUP has a single VLIW slot).
    ex = jnp.exp(jnp.minimum(x, 20.0))
    n = ex * (ex + 2.0)
    t = n / (n + 2.0)
    return jnp.where(x > 20.0, x, x * t)     # matches F.softplus threshold=20 behaviour


def fused_resnet_kernel(x_ref, t_ref, wt1_ref, wt2_ref, wmt_ref, rwt_ref, pv_ref,
                        o_ref, p1_ref, p2_ref, *, H, W, c_in, c_out, groups):
    L = H * W
    x = x_ref[0]                                       # (c_in, L): channels x flat spatial

    # Lane-index masks for the x-borders of the 3x3 halo (y-borders are handled by the
    # valid output range [a, b) below; everything outside stays zero in the scratch).
    col = lax.broadcasted_iota(jnp.int32, (1, L), 1) % W
    not_left = col >= 1                                # x-1 inside the image
    not_right = col < (W - 1)                          # x+1 inside the image

    def conv3x3(src, wt, patches_ref, c):
        # im2col into a (9*c, L) VMEM scratch, then ONE MXU matmul (c_out, 9c) @ (9c, L).
        patches_ref[...] = jnp.zeros_like(patches_ref)
        for ky in range(3):
            for kx in range(3):
                tap = ky * 3 + kx
                off = (ky - 1) * W + (kx - 1)          # flat-index shift of this tap
                a = max(0, -off)                       # first output position with a valid source
                b = L - max(0, off)                    # one past the last valid output position
                sl = src[:, a + off:b + off]           # (c, b-a)
                if kx == 0:
                    sl = jnp.where(not_left[:, a:b], sl, 0.0)
                elif kx == 2:
                    sl = jnp.where(not_right[:, a:b], sl, 0.0)
                patches_ref[pl.ds(tap * c, c), pl.ds(a, b - a)] = sl
        return jnp.dot(wt, patches_ref[...], preferred_element_type=jnp.float32)

    cg = c_out // groups
    inv_n = 1.0 / (L * cg)
    if cg > 1:
        gi = lax.broadcasted_iota(jnp.int32, (c_out, c_out), 0) // cg
        gj = lax.broadcasted_iota(jnp.int32, (c_out, c_out), 1) // cg
        gmat = (gi == gj).astype(jnp.float32)          # same-group indicator matrix

    def gn_mish(z, gamma, beta):
        # GroupNorm over (channels-in-group x spatial), then Mish.  Stats are lane (XLU)
        # reductions; cross-channel mixing (only needed if cg > 1) is a tiny MXU matmul.
        if cg == 1:
            mean = jnp.sum(z, axis=1, keepdims=True) * inv_n
            zc = z - mean
            var = jnp.sum(zc * zc, axis=1, keepdims=True) * inv_n
        else:
            mean = jnp.sum(jnp.dot(gmat, z, preferred_element_type=jnp.float32),
                           axis=1, keepdims=True) * inv_n
            zc = z - mean
            var = jnp.sum(jnp.dot(gmat, zc * zc, preferred_element_type=jnp.float32),
                          axis=1, keepdims=True) * inv_n
        return _mish(zc * lax.rsqrt(var + EPS) * gamma + beta)

    pv = pv_ref[...]                                   # packed per-channel vectors (c_out, 8)
    b1, g1, be1 = pv[:, 0:1], pv[:, 1:2], pv[:, 2:3]
    b2, g2, be2 = pv[:, 3:4], pv[:, 4:5], pv[:, 5:6]
    rb, bm = pv[:, 6:7], pv[:, 7:8]

    # ---- block1: conv3x3 + GroupNorm + Mish ----
    h = gn_mish(conv3x3(x, wt1_ref[...], p1_ref, c_in) + b1, g1, be1)

    # ---- time MLP (Mish -> Linear), added as a per-channel column bias ----
    tm = _mish(t_ref[0])                               # (1, T)
    h = h + jnp.sum(wmt_ref[...] * tm, axis=1, keepdims=True) + bm

    # ---- block2: conv3x3 + GroupNorm + Mish ----
    h = gn_mish(conv3x3(h, wt2_ref[...], p2_ref, c_out) + b2, g2, be2)

    # ---- 1x1 residual conv + add ----
    res = jnp.dot(rwt_ref[...], x, preferred_element_type=jnp.float32) + rb
    o_ref[0] = (h + res).astype(o_ref.dtype)


# --------------------------------- wrapper -----------------------------------

def resnet_block_forward(x_nchw, time_emb, p, *, groups=8):
    """Equivalent of ResnetBlock.forward(x, time_emb).  x: (N, C_in, H, W) f32 (NCHW)."""
    N, C_in, H, W = x_nchw.shape
    C_out = p["w1"].shape[-1]
    T = time_emb.shape[-1]
    L = H * W

    # Pure reshapes (no transposes): channels stay on sublanes, H*W goes to lanes.
    x_flat = x_nchw.astype(jnp.float32).reshape(N, C_in, L)
    t_in = time_emb.astype(jnp.float32).reshape(N, 1, T)

    # Conv weights HWIO -> (C_out, 9*C) rows matching the tap-major / channel-minor im2col.
    wt1 = jnp.transpose(p["w1"], (3, 0, 1, 2)).reshape(C_out, 9 * C_in)
    wt2 = jnp.transpose(p["w2"], (3, 0, 1, 2)).reshape(C_out, 9 * C_out)
    wmt = jnp.transpose(p["wm"])                       # (C_out, T)
    rwt = jnp.transpose(p["rw"])                       # (C_out, C_in)
    # Pack all per-channel vectors into one (C_out, 8) array -> one DMA instead of eight.
    pvec = jnp.stack([p["b1"], p["g1"], p["be1"], p["b2"], p["g2"], p["be2"],
                      p["rb"], p["bm"]], axis=1).astype(jnp.float32)

    kern = functools.partial(fused_resnet_kernel, H=H, W=W,
                             c_in=C_in, c_out=C_out, groups=groups)
    rep = lambda i: (0, 0)                             # weights: same block every grid step

    # NOTE on bf16: at realistic channel counts (C >= 128) the matmul operands should be cast
    # to bf16 (f32 accumulation) on v6e/v7x; at C=4/8 the MXU is latency-bound so we keep f32.
    out_flat = pl.pallas_call(
        kern,
        out_shape=jax.ShapeDtypeStruct((N, C_out, L), jnp.float32),
        grid=(N,),                                     # >= 2 parallel steps -> both v7x TCs busy
        in_specs=[
            pl.BlockSpec((1, C_in, L), lambda i: (i, 0, 0)),
            pl.BlockSpec((1, 1, T), lambda i: (i, 0, 0)),
            pl.BlockSpec((C_out, 9 * C_in), rep),
            pl.BlockSpec((C_out, 9 * C_out), rep),
            pl.BlockSpec((C_out, T), rep),
            pl.BlockSpec((C_out, C_in), rep),
            pl.BlockSpec((C_out, 8), rep),
        ],
        out_specs=pl.BlockSpec((1, C_out, L), lambda i: (i, 0, 0)),
        scratch_shapes=[pltpu.VMEM((9 * C_in, L), jnp.float32),   # im2col buffer, conv1
                        pltpu.VMEM((9 * C_out, L), jnp.float32)],  # im2col buffer, conv2
        compiler_params=pltpu.CompilerParams(dimension_semantics=("parallel",)),
    )(x_flat, t_in, wt1, wt2, wmt, rwt, pvec)

    return out_flat.reshape(N, C_out, H, W)            # free reshape back to NCHW


# ----------------------------- pure-JAX reference -----------------------------

def ref_forward(x, time_emb, p, *, groups=8):
    def conv3x3(x, w_hwio, b):
        w = jnp.transpose(w_hwio, (3, 2, 0, 1))        # OIHW
        y = lax.conv_general_dilated(x, w, (1, 1), ((1, 1), (1, 1)),
                                     dimension_numbers=("NCHW", "OIHW", "NCHW"))
        return y + b[None, :, None, None]

    def groupnorm(x, gamma, beta):
        N, C, H, W = x.shape
        g = x.reshape(N, groups, C // groups, H, W)
        mean = g.mean(axis=(2, 3, 4), keepdims=True)
        var = ((g - mean) ** 2).mean(axis=(2, 3, 4), keepdims=True)
        gn = ((g - mean) / jnp.sqrt(var + EPS)).reshape(N, C, H, W)
        return gn * gamma[None, :, None, None] + beta[None, :, None, None]

    def mish(x):
        sp = jnp.where(x > 20.0, x, jnp.log1p(jnp.exp(jnp.minimum(x, 20.0))))
        return x * jnp.tanh(sp)

    h = mish(groupnorm(conv3x3(x, p["w1"], p["b1"]), p["g1"], p["be1"]))
    t = mish(time_emb) @ p["wm"] + p["bm"]
    h = h + t[:, :, None, None]
    h = mish(groupnorm(conv3x3(h, p["w2"], p["b2"]), p["g2"], p["be2"]))
    res = jnp.einsum("nchw,cd->ndhw", x, p["rw"]) + p["rb"][None, :, None, None]
    return h + res


# ------------------------------------ main ------------------------------------

if __name__ == "__main__":
    dim, dim_out, time_emb_dim, groups = 4, 8, 8, 8
    N, H, W = 2, 16, 16

    key = jax.random.PRNGKey(0)
    keys = jax.random.split(key, 16)

    def init(k, shape, scale=0.1):
        return jax.random.normal(k, shape, jnp.float32) * scale

    p = {
        "w1": init(keys[0], (3, 3, dim, dim_out)),     # HWIO conv weight
        "b1": init(keys[1], (dim_out,)),
        "g1": 1.0 + init(keys[2], (dim_out,)),         # GroupNorm weight
        "be1": init(keys[3], (dim_out,)),              # GroupNorm bias
        "w2": init(keys[4], (3, 3, dim_out, dim_out)),
        "b2": init(keys[5], (dim_out,)),
        "g2": 1.0 + init(keys[6], (dim_out,)),
        "be2": init(keys[7], (dim_out,)),
        "wm": init(keys[8], (time_emb_dim, dim_out)),  # Linear weight, (in, out)
        "bm": init(keys[9], (dim_out,)),
    }
    if dim != dim_out:
        p["rw"] = init(keys[10], (dim, dim_out))       # 1x1 res_conv weight
        p["rb"] = init(keys[11], (dim_out,))
    else:
        p["rw"] = jnp.eye(dim, dtype=jnp.float32)      # nn.Identity()
        p["rb"] = jnp.zeros((dim,), jnp.float32)

    x = jax.random.normal(keys[12], (N, dim, H, W), jnp.float32)
    t = jax.random.normal(keys[13], (N, time_emb_dim), jnp.float32)

    out = resnet_block_forward(x, t, p, groups=groups)
    out = jax.block_until_ready(out)
    assert out.shape == (N, dim_out, H, W)

    ref = ref_forward(x, t, p, groups=groups)
    np.testing.assert_allclose(np.asarray(out), np.asarray(ref), rtol=2e-4, atol=2e-4)

    print("KERNEL_OK")
</pallas_src>

<mosaic_0001>
module attributes {stable_mosaic.version = 11 : i64} {
  func.func @fused_resnet_kernel(%arg0: i32, %arg1: memref<1x4x256xf32, #tpu.memory_space<vmem>>, %arg2: memref<1x1x8xf32, #tpu.memory_space<vmem>>, %arg3: memref<8x36xf32, #tpu.memory_space<vmem>>, %arg4: memref<8x72xf32, #tpu.memory_space<vmem>>, %arg5: memref<8x8xf32, #tpu.memory_space<vmem>>, %arg6: memref<8x4xf32, #tpu.memory_space<vmem>>, %arg7: memref<8x8xf32, #tpu.memory_space<vmem>>, %arg8: memref<1x8x256xf32, #tpu.memory_space<vmem>>, %arg9: memref<36x256xf32, #tpu.memory_space<vmem>>, %arg10: memref<72x256xf32, #tpu.memory_space<vmem>>) attributes {dimension_semantics = [#tpu.dimension_semantics<parallel>], iteration_bounds = array<i64: 2>, scalar_prefetch = 0 : i64, scratch_operands = 2 : i64, tpu.core_type = #tpu.core_type<tc>, window_params = [{transform_indices = @transform_0, window_bounds = array<i64: 1, 4, 256>}, {transform_indices = @transform_1, window_bounds = array<i64: 1, 1, 8>}, {pipeline_mode = #tpu.pipeline_mode<synchronous>, transform_indices = @transform_2, window_bounds = array<i64: 8, 36>}, {pipeline_mode = #tpu.pipeline_mode<synchronous>, transform_indices = @transform_3, window_bounds = array<i64: 8, 72>}, {pipeline_mode = #tpu.pipeline_mode<synchronous>, transform_indices = @transform_4, window_bounds = array<i64: 8, 8>}, {pipeline_mode = #tpu.pipeline_mode<synchronous>, transform_indices = @transform_5, window_bounds = array<i64: 8, 4>}, {pipeline_mode = #tpu.pipeline_mode<synchronous>, transform_indices = @transform_6, window_bounds = array<i64: 8, 8>}, {transform_indices = @transform_7, window_bounds = array<i64: 1, 8, 256>}]} {
    %c0 = arith.constant 0 : index
    %c0_0 = arith.constant 0 : index
    %c0_1 = arith.constant 0 : index
    %0 = vector.load %arg1[%c0, %c0_0, %c0_1] : memref<1x4x256xf32, #tpu.memory_space<vmem>>, vector<1x4x256xf32>
    %1 = vector.shape_cast %0 : vector<1x4x256xf32> to vector<4x256xf32>
    %2 = tpu.iota {dimensions = array<i32: 1>} : vector<1x256xi32>
    %c16_i32 = arith.constant 16 : i32
    %c0_i32 = arith.constant 0 : i32
    %3 = arith.cmpi eq, %c16_i32, %c0_i32 : i32
    %c1_i32 = arith.constant 1 : i32
    %4 = arith.select %3, %c1_i32, %c16_i32 : i32
    %5 = vector.broadcast %4 : i32 to vector<1x256xi32>
    %6 = arith.remsi %2, %5 : vector<1x256xi32>
    %c0_i32_2 = arith.constant 0 : i32
    %7 = vector.broadcast %c0_i32_2 : i32 to vector<1x256xi32>
    %8 = arith.cmpi ne, %6, %7 : vector<1x256xi32>
    %c0_i32_3 = arith.constant 0 : i32
    %9 = vector.broadcast %c0_i32_3 : i32 to vector<1x256xi32>
    %10 = arith.cmpi slt, %6, %9 : vector<1x256xi32>
    %c0_i32_4 = arith.constant 0 : i32
    %11 = arith.cmpi slt, %4, %c0_i32_4 : i32
    %12 = vector.broadcast %11 : i1 to vector<1x256xi1>
    %13 = vector.broadcast %12 : vector<1x256xi1> to vector<1x256xi1>
    %14 = arith.xori %10, %13 : vector<1x256xi1>
    %15 = arith.andi %14, %8 : vector<1x256xi1>
    %16 = vector.broadcast %4 : i32 to vector<1x256xi32>
    %17 = arith.addi %6, %16 : vector<1x256xi32>
    %18 = arith.select %15, %17, %6 : vector<1x256xi1>, vector<1x256xi32>
    %c1_i32_5 = arith.constant 1 : i32
    %19 = vector.broadcast %c1_i32_5 : i32 to vector<1x256xi32>
    %20 = arith.cmpi sge, %18, %19 : vector<1x256xi32>
    %c15_i32 = arith.constant 15 : i32
    %21 = vector.broadcast %c15_i32 : i32 to vector<1x256xi32>
    %22 = arith.cmpi slt, %18, %21 : vector<1x256xi32>
    %c0_6 = arith.constant 0 : index
    %c0_7 = arith.constant 0 : index
    %23 = vector.load %arg7[%c0_6, %c0_7] : memref<8x8xf32, #tpu.memory_space<vmem>>, vector<8x8xf32>
    %24 = vector.extract_strided_slice %23 {offsets = [0, 0], sizes = [8, 1], strides = [1, 1]} : vector<8x8xf32> to vector<8x1xf32>
    %25 = vector.extract_strided_slice %23 {offsets = [0, 1], sizes = [8, 1], strides = [1, 1]} : vector<8x8xf32> to vector<8x1xf32>
    %26 = vector.extract_strided_slice %23 {offsets = [0, 2], sizes = [8, 1], strides = [1, 1]} : vector<8x8xf32> to vector<8x1xf32>
    %27 = vector.extract_strided_slice %23 {offsets = [0, 3], sizes = [8, 1], strides = [1, 1]} : vector<8x8xf32> to vector<8x1xf32>
    %28 = vector.extract_strided_slice %23 {offsets = [0, 4], sizes = [8, 1], strides = [1, 1]} : vector<8x8xf32> to vector<8x1xf32>
    %29 = vector.extract_strided_slice %23 {offsets = [0, 5], sizes = [8, 1], strides = [1, 1]} : vector<8x8xf32> to vector<8x1xf32>
    %30 = vector.extract_strided_slice %23 {offsets = [0, 6], sizes = [8, 1], strides = [1, 1]} : vector<8x8xf32> to vector<8x1xf32>
    %31 = vector.extract_strided_slice %23 {offsets = [0, 7], sizes = [8, 1], strides = [1, 1]} : vector<8x8xf32> to vector<8x1xf32>
    %c0_8 = arith.constant 0 : index
    %c0_9 = arith.constant 0 : index
    %32 = vector.load %arg3[%c0_8, %c0_9] : memref<8x36xf32, #tpu.memory_space<vmem>>, vector<8x36xf32>
    %cst = arith.constant 0.000000e+00 : f32
    %33 = vector.broadcast %cst : f32 to vector<36x256xf32>
    %c0_10 = arith.constant 0 : index
    %c0_11 = arith.constant 0 : index
    %34 = vector.load %arg9[%c0_10, %c0_11] : memref<36x256xf32, #tpu.memory_space<vmem>>, vector<36x256xf32>
    tpu.vector_store %arg9[%c0_10, %c0_11], %33 {strides = array<i32>} : memref<36x256xf32, #tpu.memory_space<vmem>>, vector<36x256xf32>,
    %35 = vector.extract_strided_slice %1 {offsets = [0, 0], sizes = [4, 239], strides = [1, 1]} : vector<4x256xf32> to vector<4x239xf32>
    %36 = vector.extract_strided_slice %20 {offsets = [0, 17], sizes = [1, 239], strides = [1, 1]} : vector<1x256xi1> to vector<1x239xi1>
    %cst_12 = arith.constant 0.000000e+00 : f32
    %37 = vector.shape_cast %36 : vector<1x239xi1> to vector<1x239xi1>
    %38 = vector.broadcast %37 : vector<1x239xi1> to vector<4x239xi1>
    %39 = vector.broadcast %cst_12 : f32 to vector<4x239xf32>
    %40 = arith.select %38, %35, %39 : vector<4x239xi1>, vector<4x239xf32>
    %c0_13 = arith.constant 0 : index
    %c17 = arith.constant 17 : index
    %41 = vector.load %arg9[%c0_13, %c17] : memref<36x256xf32, #tpu.memory_space<vmem>>, vector<4x239xf32>
    tpu.vector_store %arg9[%c0_13, %c17], %40 {strides = array<i32>} : memref<36x256xf32, #tpu.memory_space<vmem>>, vector<4x239xf32>,
    %42 = vector.extract_strided_slice %1 {offsets = [0, 0], sizes = [4, 240], strides = [1, 1]} : vector<4x256xf32> to vector<4x240xf32>
    %c4 = arith.constant 4 : index
    %c16 = arith.constant 16 : index
    %43 = vector.load %arg9[%c4, %c16] : memref<36x256xf32, #tpu.memory_space<vmem>>, vector<4x240xf32>
    tpu.vector_store %arg9[%c4, %c16], %42 {strides = array<i32>} : memref<36x256xf32, #tpu.memory_space<vmem>>, vector<4x240xf32>,
    %44 = vector.extract_strided_slice %1 {offsets = [0, 0], sizes = [4, 241], strides = [1, 1]} : vector<4x256xf32> to vector<4x241xf32>
    %45 = vector.extract_strided_slice %22 {offsets = [0, 15], sizes = [1, 241], strides = [1, 1]} : vector<1x256xi1> to vector<1x241xi1>
    %cst_14 = arith.constant 0.000000e+00 : f32
    %46 = vector.shape_cast %45 : vector<1x241xi1> to vector<1x241xi1>
    %47 = vector.broadcast %46 : vector<1x241xi1> to vector<4x241xi1>
    %48 = vector.broadcast %cst_14 : f32 to vector<4x241xf32>
    %49 = arith.select %47, %44, %48 : vector<4x241xi1>, vector<4x241xf32>
    %c8 = arith.constant 8 : index
    %c15 = arith.constant 15 : index
    %50 = vector.load %arg9[%c8, %c15] : memref<36x256xf32, #tpu.memory_space<vmem>>, vector<4x241xf32>
    tpu.vector_store %arg9[%c8, %c15], %49 {strides = array<i32>} : memref<36x256xf32, #tpu.memory_space<vmem>>, vector<4x241xf32>,
    %51 = vector.extract_strided_slice %1 {offsets = [0, 0], sizes = [4, 255], strides = [1, 1]} : vector<4x256xf32> to vector<4x255xf32>
    %52 = vector.extract_strided_slice %20 {offsets = [0, 1], sizes = [1, 255], strides = [1, 1]} : vector<1x256xi1> to vector<1x255xi1>
    %cst_15 = arith.constant 0.000000e+00 : f32
    %53 = vector.shape_cast %52 : vector<1x255xi1> to vector<1x255xi1>
    %54 = vector.broadcast %53 : vector<1x255xi1> to vector<4x255xi1>
    %55 = vector.broadcast %cst_15 : f32 to vector<4x255xf32>
    %56 = arith.select %54, %51, %55 : vector<4x255xi1>, vector<4x255xf32>
    %c12 = arith.constant 12 : index
    %c1 = arith.constant 1 : index
    %57 = vector.load %arg9[%c12, %c1] : memref<36x256xf32, #tpu.memory_space<vmem>>, vector<4x255xf32>
    tpu.vector_store %arg9[%c12, %c1], %56 {strides = array<i32>} : memref<36x256xf32, #tpu.memory_space<vmem>>, vector<4x255xf32>,
    %c16_16 = arith.constant 16 : index
    %c0_17 = arith.constant 0 : index
    %58 = vector.load %arg9[%c16_16, %c0_17] : memref<36x256xf32, #tpu.memory_space<vmem>>, vector<4x256xf32>
    tpu.vector_store %arg9[%c16_16, %c0_17], %1 {strides = array<i32>} : memref<36x256xf32, #tpu.memory_space<vmem>>, vector<4x256xf32>,
    %59 = vector.extract_strided_slice %1 {offsets = [0, 1], sizes = [4, 255], strides = [1, 1]} : vector<4x256xf32> to vector<4x255xf32>
    %60 = vector.extract_strided_slice %22 {offsets = [0, 0], sizes = [1, 255], strides = [1, 1]} : vector<1x256xi1> to vector<1x255xi1>
    %cst_18 = arith.constant 0.000000e+00 : f32
    %61 = vector.shape_cast %60 : vector<1x255xi1> to vector<1x255xi1>
    %62 = vector.broadcast %61 : vector<1x255xi1> to vector<4x255xi1>
    %63 = vector.broadcast %cst_18 : f32 to vector<4x255xf32>
    %64 = arith.select %62, %59, %63 : vector<4x255xi1>, vector<4x255xf32>
    %c20 = arith.constant 20 : index
    %c0_19 = arith.constant 0 : index
    %65 = vector.load %arg9[%c20, %c0_19] : memref<36x256xf32, #tpu.memory_space<vmem>>, vector<4x255xf32>
    tpu.vector_store %arg9[%c20, %c0_19], %64 {strides = array<i32>} : memref<36x256xf32, #tpu.memory_space<vmem>>, vector<4x255xf32>,
    %66 = vector.extract_strided_slice %1 {offsets = [0, 15], sizes = [4, 241], strides = [1, 1]} : vector<4x256xf32> to vector<4x241xf32>
    %67 = vector.extract_strided_slice %20 {offsets = [0, 0], sizes = [1, 241], strides = [1, 1]} : vector<1x256xi1> to vector<1x241xi1>
    %cst_20 = arith.constant 0.000000e+00 : f32
    %68 = vector.shape_cast %67 : vector<1x241xi1> to vector<1x241xi1>
    %69 = vector.broadcast %68 : vector<1x241xi1> to vector<4x241xi1>
    %70 = vector.broadcast %cst_20 : f32 to vector<4x241xf32>
    %71 = arith.select %69, %66, %70 : vector<4x241xi1>, vector<4x241xf32>
    %c24 = arith.constant 24 : index
    %c0_21 = arith.constant 0 : index
    %72 = vector.load %arg9[%c24, %c0_21] : memref<36x256xf32, #tpu.memory_space<vmem>>, vector<4x241xf32>
    tpu.vector_store %arg9[%c24, %c0_21], %71 {strides = array<i32>} : memref<36x256xf32, #tpu.memory_space<vmem>>, vector<4x241xf32>,
    %73 = vector.extract_strided_slice %1 {offsets = [0, 16], sizes = [4, 240], strides = [1, 1]} : vector<4x256xf32> to vector<4x240xf32>
    %c28 = arith.constant 28 : index
    %c0_22 = arith.constant 0 : index
    %74 = vector.load %arg9[%c28, %c0_22] : memref<36x256xf32, #tpu.memory_space<vmem>>, vector<4x240xf32>
    tpu.vector_store %arg9[%c28, %c0_22], %73 {strides = array<i32>} : memref<36x256xf32, #tpu.memory_space<vmem>>, vector<4x240xf32>,
    %75 = vector.extract_strided_slice %1 {offsets = [0, 17], sizes = [4, 239], strides = [1, 1]} : vector<4x256xf32> to vector<4x239xf32>
    %76 = vector.extract_strided_slice %22 {offsets = [0, 0], sizes = [1, 239], strides = [1, 1]} : vector<1x256xi1> to vector<1x239xi1>
    %cst_23 = arith.constant 0.000000e+00 : f32
    %77 = vector.shape_cast %76 : vector<1x239xi1> to vector<1x239xi1>
    %78 = vector.broadcast %77 : vector<1x239xi1> to vector<4x239xi1>
    %79 = vector.broadcast %cst_23 : f32 to vector<4x239xf32>
    %80 = arith.select %78, %75, %79 : vector<4x239xi1>, vector<4x239xf32>
    %c32 = arith.constant 32 : index
    %c0_24 = arith.constant 0 : index
    %81 = vector.load %arg9[%c32, %c0_24] : memref<36x256xf32, #tpu.memory_space<vmem>>, vector<4x239xf32>
    tpu.vector_store %arg9[%c32, %c0_24], %80 {strides = array<i32>} : memref<36x256xf32, #tpu.memory_space<vmem>>, vector<4x239xf32>,
    %c0_25 = arith.constant 0 : index
    %c0_26 = arith.constant 0 : index
    %82 = vector.load %arg9[%c0_25, %c0_26] : memref<36x256xf32, #tpu.memory_space<vmem>>, vector<36x256xf32>
    %cst_27 = arith.constant dense<0.000000e+00> : vector<8x256xf32>
    %83 = tpu.matmul %32, %82, %cst_27 {dimension_numbers = #tpu.dot_dimension_numbers<[1], [0], [0], [1], [0, 0, 1, 1], [], []>} : vector<8x36xf32>, vector<36x256xf32>, vector<8x256xf32> -> vector<8x256xf32>
    %84 = vector.broadcast %24 : vector<8x1xf32> to vector<8x256xf32>
    %85 = arith.addf %83, %84 : vector<8x256xf32>
    %cst_28 = arith.constant dense<0.000000e+00> : vector<8xf32>
    %86 = vector.multi_reduction <add>, %85, %cst_28 [1] : vector<8x256xf32> to vector<8xf32>
    %87 = vector.shape_cast %86 : vector<8xf32> to vector<8x1xf32>
    %cst_29 = arith.constant 3.906250e-03 : f32
    %88 = vector.broadcast %cst_29 : f32 to vector<8x1xf32>
    %89 = arith.mulf %87, %88 : vector<8x1xf32>
    %90 = vector.broadcast %89 : vector<8x1xf32> to vector<8x256xf32>
    %91 = arith.subf %85, %90 : vector<8x256xf32>
    %92 = arith.mulf %91, %91 : vector<8x256xf32>
    %cst_30 = arith.constant dense<0.000000e+00> : vector<8xf32>
    %93 = vector.multi_reduction <add>, %92, %cst_30 [1] : vector<8x256xf32> to vector<8xf32>
    %94 = vector.shape_cast %93 : vector<8xf32> to vector<8x1xf32>
    %cst_31 = arith.constant 3.906250e-03 : f32
    %95 = vector.broadcast %cst_31 : f32 to vector<8x1xf32>
    %96 = arith.mulf %94, %95 : vector<8x1xf32>
    %cst_32 = arith.constant 9.99999974E-6 : f32
    %97 = vector.broadcast %cst_32 : f32 to vector<8x1xf32>
    %98 = arith.addf %96, %97 : vector<8x1xf32>
    %99 = math.rsqrt %98 : vector<8x1xf32>
    %100 = vector.broadcast %99 : vector<8x1xf32> to vector<8x256xf32>
    %101 = arith.mulf %91, %100 : vector<8x256xf32>
    %102 = vector.broadcast %25 : vector<8x1xf32> to vector<8x256xf32>
    %103 = arith.mulf %101, %102 : vector<8x256xf32>
    %104 = vector.broadcast %26 : vector<8x1xf32> to vector<8x256xf32>
    %105 = arith.addf %103, %104 : vector<8x256xf32>
    %cst_33 = arith.constant 2.000000e+01 : f32
    %106 = vector.broadcast %cst_33 : f32 to vector<8x256xf32>
    %107 = arith.minimumf %105, %106 : vector<8x256xf32>
    %108 = math.exp %107 : vector<8x256xf32>
    %cst_34 = arith.constant 2.000000e+00 : f32
    %109 = vector.broadcast %cst_34 : f32 to vector<8x256xf32>
    %110 = arith.addf %108, %109 : vector<8x256xf32>
    %111 = arith.mulf %108, %110 : vector<8x256xf32>
    %cst_35 = arith.constant 2.000000e+00 : f32
    %112 = vector.broadcast %cst_35 : f32 to vector<8x256xf32>
    %113 = arith.addf %111, %112 : vector<8x256xf32>
    %114 = arith.divf %111, %113 : vector<8x256xf32>
    %cst_36 = arith.constant 2.000000e+01 : f32
    %115 = vector.broadcast %cst_36 : f32 to vector<8x256xf32>
    %116 = arith.cmpf ogt, %105, %115 : vector<8x256xf32>
    %117 = arith.mulf %105, %114 : vector<8x256xf32>
    %118 = arith.select %116, %105, %117 : vector<8x256xi1>, vector<8x256xf32>
    %c0_37 = arith.constant 0 : index
    %c0_38 = arith.constant 0 : index
    %c0_39 = arith.constant 0 : index
    %119 = vector.load %arg2[%c0_37, %c0_38, %c0_39] : memref<1x1x8xf32, #tpu.memory_space<vmem>>, vector<1x1x8xf32>
    %120 = vector.shape_cast %119 : vector<1x1x8xf32> to vector<1x8xf32>
    %cst_40 = arith.constant 2.000000e+01 : f32
    %121 = vector.broadcast %cst_40 : f32 to vector<1x8xf32>
    %122 = arith.minimumf %120, %121 : vector<1x8xf32>
    %123 = math.exp %122 : vector<1x8xf32>
    %cst_41 = arith.constant 2.000000e+00 : f32
    %124 = vector.broadcast %cst_41 : f32 to vector<1x8xf32>
    %125 = arith.addf %123, %124 : vector<1x8xf32>
    %126 = arith.mulf %123, %125 : vector<1x8xf32>
    %cst_42 = arith.constant 2.000000e+00 : f32
    %127 = vector.broadcast %cst_42 : f32 to vector<1x8xf32>
    %128 = arith.addf %126, %127 : vector<1x8xf32>
    %129 = arith.divf %126, %128 : vector<1x8xf32>
    %cst_43 = arith.constant 2.000000e+01 : f32
    %130 = vector.broadcast %cst_43 : f32 to vector<1x8xf32>
    %131 = arith.cmpf ogt, %120, %130 : vector<1x8xf32>
    %132 = arith.mulf %120, %129 : vector<1x8xf32>
    %133 = arith.select %131, %120, %132 : vector<1x8xi1>, vector<1x8xf32>
    %c0_44 = arith.constant 0 : index
    %c0_45 = arith.constant 0 : index
    %134 = vector.load %arg5[%c0_44, %c0_45] : memref<8x8xf32, #tpu.memory_space<vmem>>, vector<8x8xf32>
    %135 = vector.broadcast %133 : vector<1x8xf32> to vector<8x8xf32>
    %136 = arith.mulf %134, %135 : vector<8x8xf32>
    %cst_46 = arith.constant dense<0.000000e+00> : vector<8xf32>
    %137 = vector.multi_reduction <add>, %136, %cst_46 [1] : vector<8x8xf32> to vector<8xf32>
    %138 = vector.shape_cast %137 : vector<8xf32> to vector<8x1xf32>
    %139 = vector.broadcast %138 : vector<8x1xf32> to vector<8x256xf32>
    %140 = arith.addf %118, %139 : vector<8x256xf32>
    %141 = vector.broadcast %31 : vector<8x1xf32> to vector<8x256xf32>
    %142 = arith.addf %140, %141 : vector<8x256xf32>
    %c0_47 = arith.constant 0 : index
    %c0_48 = arith.constant 0 : index
    %143 = vector.load %arg4[%c0_47, %c0_48] : memref<8x72xf32, #tpu.memory_space<vmem>>, vector<8x72xf32>
    %cst_49 = arith.constant 0.000000e+00 : f32
    %144 = vector.broadcast %cst_49 : f32 to vector<72x256xf32>
    %c0_50 = arith.constant 0 : index
    %c0_51 = arith.constant 0 : index
    %145 = vector.load %arg10[%c0_50, %c0_51] : memref<72x256xf32, #tpu.memory_space<vmem>>, vector<72x256xf32>
    tpu.vector_store %arg10[%c0_50, %c0_51], %144 {strides = array<i32>} : memref<72x256xf32, #tpu.memory_space<vmem>>, vector<72x256xf32>,
    %146 = vector.extract_strided_slice %142 {offsets = [0, 0], sizes = [8, 239], strides = [1, 1]} : vector<8x256xf32> to vector<8x239xf32>
    %147 = vector.extract_strided_slice %20 {offsets = [0, 17], sizes = [1, 239], strides = [1, 1]} : vector<1x256xi1> to vector<1x239xi1>
    %cst_52 = arith.constant 0.000000e+00 : f32
    %148 = vector.shape_cast %147 : vector<1x239xi1> to vector<1x239xi1>
    %149 = vector.broadcast %148 : vector<1x239xi1> to vector<8x239xi1>
    %150 = vector.broadcast %cst_52 : f32 to vector<8x239xf32>
    %151 = arith.select %149, %146, %150 : vector<8x239xi1>, vector<8x239xf32>
    %c0_53 = arith.constant 0 : index
    %c17_54 = arith.constant 17 : index
    %152 = vector.load %arg10[%c0_53, %c17_54] : memref<72x256xf32, #tpu.memory_space<vmem>>, vector<8x239xf32>
    tpu.vector_store %arg10[%c0_53, %c17_54], %151 {strides = array<i32>} : memref<72x256xf32, #tpu.memory_space<vmem>>, vector<8x239xf32>,
    %153 = vector.extract_strided_slice %142 {offsets = [0, 0], sizes = [8, 240], strides = [1, 1]} : vector<8x256xf32> to vector<8x240xf32>
    %c8_55 = arith.constant 8 : index
    %c16_56 = arith.constant 16 : index
    %154 = vector.load %arg10[%c8_55, %c16_56] : memref<72x256xf32, #tpu.memory_space<vmem>>, vector<8x240xf32>
    tpu.vector_store %arg10[%c8_55, %c16_56], %153 {strides = array<i32>} : memref<72x256xf32, #tpu.memory_space<vmem>>, vector<8x240xf32>,
    %155 = vector.extract_strided_slice %142 {offsets = [0, 0], sizes = [8, 241], strides = [1, 1]} : vector<8x256xf32> to vector<8x241xf32>
    %156 = vector.extract_strided_slice %22 {offsets = [0, 15], sizes = [1, 241], strides = [1, 1]} : vector<1x256xi1> to vector<1x241xi1>
    %cst_57 = arith.constant 0.000000e+00 : f32
    %157 = vector.shape_cast %156 : vector<1x241xi1> to vector<1x241xi1>
    %158 = vector.broadcast %157 : vector<1x241xi1> to vector<8x241xi1>
    %159 = vector.broadcast %cst_57 : f32 to vector<8x241xf32>
    %160 = arith.select %158, %155, %159 : vector<8x241xi1>, vector<8x241xf32>
    %c16_58 = arith.constant 16 : index
    %c15_59 = arith.constant 15 : index
    %161 = vector.load %arg10[%c16_58, %c15_59] : memref<72x256xf32, #tpu.memory_space<vmem>>, vector<8x241xf32>
    tpu.vector_store %arg10[%c16_58, %c15_59], %160 {strides = array<i32>} : memref<72x256xf32, #tpu.memory_space<vmem>>, vector<8x241xf32>,
    %162 = vector.extract_strided_slice %142 {offsets = [0, 0], sizes = [8, 255], strides = [1, 1]} : vector<8x256xf32> to vector<8x255xf32>
    %163 = vector.extract_strided_slice %20 {offsets = [0, 1], sizes = [1, 255], strides = [1, 1]} : vector<1x256xi1> to vector<1x255xi1>
    %cst_60 = arith.constant 0.000000e+00 : f32
    %164 = vector.shape_cast %163 : vector<1x255xi1> to vector<1x255xi1>
    %165 = vector.broadcast %164 : vector<1x255xi1> to vector<8x255xi1>
    %166 = vector.broadcast %cst_60 : f32 to vector<8x255xf32>
    %167 = arith.select %165, %162, %166 : vector<8x255xi1>, vector<8x255xf32>
    %c24_61 = arith.constant 24 : index
    %c1_62 = arith.constant 1 : index
    %168 = vector.load %arg10[%c24_61, %c1_62] : memref<72x256xf32, #tpu.memory_space<vmem>>, vector<8x255xf32>
    tpu.vector_store %arg10[%c24_61, %c1_62], %167 {strides = array<i32>} : memref<72x256xf32, #tpu.memory_space<vmem>>, vector<8x255xf32>,
    %c32_63 = arith.constant 32 : index
    %c0_64 = arith.constant 0 : index
    %169 = vector.load %arg10[%c32_63, %c0_64] : memref<72x256xf32, #tpu.memory_space<vmem>>, vector<8x256xf32>
    tpu.vector_store %arg10[%c32_63, %c0_64], %142 {strides = array<i32>} : memref<72x256xf32, #tpu.memory_space<vmem>>, vector<8x256xf32>,
    %170 = vector.extract_strided_slice %142 {offsets = [0, 1], sizes = [8, 255], strides = [1, 1]} : vector<8x256xf32> to vector<8x255xf32>
    %171 = vector.extract_strided_slice %22 {offsets = [0, 0], sizes = [1, 255], strides = [1, 1]} : vector<1x256xi1> to vector<1x255xi1>
    %cst_65 = arith.constant 0.000000e+00 : f32
    %172 = vector.shape_cast %171 : vector<1x255xi1> to vector<1x255xi1>
    %173 = vector.broadcast %172 : vector<1x255xi1> to vector<8x255xi1>
    %174 = vector.broadcast %cst_65 : f32 to vector<8x255xf32>
    %175 = arith.select %173, %170, %174 : vector<8x255xi1>, vector<8x255xf32>
    %c40 = arith.constant 40 : index
    %c0_66 = arith.constant 0 : index
    %176 = vector.load %arg10[%c40, %c0_66] : memref<72x256xf32, #tpu.memory_space<vmem>>, vector<8x255xf32>
    tpu.vector_store %arg10[%c40, %c0_66], %175 {strides = array<i32>} : memref<72x256xf32, #tpu.memory_space<vmem>>, vector<8x255xf32>,
    %177 = vector.extract_strided_slice %142 {offsets = [0, 15], sizes = [8, 241], strides = [1, 1]} : vector<8x256xf32> to vector<8x241xf32>
    %178 = vector.extract_strided_slice %20 {offsets = [0, 0], sizes = [1, 241], strides = [1, 1]} : vector<1x256xi1> to vector<1x241xi1>
    %cst_67 = arith.constant 0.000000e+00 : f32
    %179 = vector.shape_cast %178 : vector<1x241xi1> to vector<1x241xi1>
    %180 = vector.broadcast %179 : vector<1x241xi1> to vector<8x241xi1>
    %181 = vector.broadcast %cst_67 : f32 to vector<8x241xf32>
    %182 = arith.select %180, %177, %181 : vector<8x241xi1>, vector<8x241xf32>
    %c48 = arith.constant 48 : index
    %c0_68 = arith.constant 0 : index
    %183 = vector.load %arg10[%c48, %c0_68] : memref<72x256xf32, #tpu.memory_space<vmem>>, vector<8x241xf32>
    tpu.vector_store %arg10[%c48, %c0_68], %182 {strides = array<i32>} : memref<72x256xf32, #tpu.memory_space<vmem>>, vector<8x241xf32>,
    %184 = vector.extract_strided_slice %142 {offsets = [0, 16], sizes = [8, 240], strides = [1, 1]} : vector<8x256xf32> to vector<8x240xf32>
    %c56 = arith.constant 56 : index
    %c0_69 = arith.constant 0 : index
    %185 = vector.load %arg10[%c56, %c0_69] : memref<72x256xf32, #tpu.memory_space<vmem>>, vector<8x240xf32>
    tpu.vector_store %arg10[%c56, %c0_69], %184 {strides = array<i32>} : memref<72x256xf32, #tpu.memory_space<vmem>>, vector<8x240xf32>,
    %186 = vector.extract_strided_slice %142 {offsets = [0, 17], sizes = [8, 239], strides = [1, 1]} : vector<8x256xf32> to vector<8x239xf32>
    %187 = vector.extract_strided_slice %22 {offsets = [0, 0], sizes = [1, 239], strides = [1, 1]} : vector<1x256xi1> to vector<1x239xi1>
    %cst_70 = arith.constant 0.000000e+00 : f32
    %188 = vector.shape_cast %187 : vector<1x239xi1> to vector<1x239xi1>
    %189 = vector.broadcast %188 : vector<1x239xi1> to vector<8x239xi1>
    %190 = vector.broadcast %cst_70 : f32 to vector<8x239xf32>
    %191 = arith.select %189, %186, %190 : vector<8x239xi1>, vector<8x239xf32>
    %c64 = arith.constant 64 : index
    %c0_71 = arith.constant 0 : index
    %192 = vector.load %arg10[%c64, %c0_71] : memref<72x256xf32, #tpu.memory_space<vmem>>, vector<8x239xf32>
    tpu.vector_store %arg10[%c64, %c0_71], %191 {strides = array<i32>} : memref<72x256xf32, #tpu.memory_space<vmem>>, vector<8x239xf32>,
    %c0_72 = arith.constant 0 : index
    %c0_73 = arith.constant 0 : index
    %193 = vector.load %arg10[%c0_72, %c0_73] : memref<72x256xf32, #tpu.memory_space<vmem>>, vector<72x256xf32>
    %cst_74 = arith.constant dense<0.000000e+00> : vector<8x256xf32>
    %194 = tpu.matmul %143, %193, %cst_74 {dimension_numbers = #tpu.dot_dimension_numbers<[1], [0], [0], [1], [0, 0, 1, 1], [], []>} : vector<8x72xf32>, vector<72x256xf32>, vector<8x256xf32> -> vector<8x256xf32>
    %195 = vector.broadcast %27 : vector<8x1xf32> to vector<8x256xf32>
    %196 = arith.addf %194, %195 : vector<8x256xf32>
    %cst_75 = arith.constant dense<0.000000e+00> : vector<8xf32>
    %197 = vector.multi_reduction <add>, %196, %cst_75 [1] : vector<8x256xf32> to vector<8xf32>
    %198 = vector.shape_cast %197 : vector<8xf32> to vector<8x1xf32>
    %cst_76 = arith.constant 3.906250e-03 : f32
    %199 = vector.broadcast %cst_76 : f32 to vector<8x1xf32>
    %200 = arith.mulf %198, %199 : vector<8x1xf32>
    %201 = vector.broadcast %200 : vector<8x1xf32> to vector<8x256xf32>
    %202 = arith.subf %196, %201 : vector<8x256xf32>
    %203 = arith.mulf %202, %202 : vector<8x256xf32>
    %cst_77 = arith.constant dense<0.000000e+00> : vector<8xf32>
    %204 = vector.multi_reduction <add>, %203, %cst_77 [1] : vector<8x256xf32> to vector<8xf32>
    %205 = vector.shape_cast %204 : vector<8xf32> to vector<8x1xf32>
    %cst_78 = arith.constant 3.906250e-03 : f32
    %206 = vector.broadcast %cst_78 : f32 to vector<8x1xf32>
    %207 = arith.mulf %205, %206 : vector<8x1xf32>
    %cst_79 = arith.constant 9.99999974E-6 : f32
    %208 = vector.broadcast %cst_79 : f32 to vector<8x1xf32>
    %209 = arith.addf %207, %208 : vector<8x1xf32>
    %210 = math.rsqrt %209 : vector<8x1xf32>
    %211 = vector.broadcast %210 : vector<8x1xf32> to vector<8x256xf32>
    %212 = arith.mulf %202, %211 : vector<8x256xf32>
    %213 = vector.broadcast %28 : vector<8x1xf32> to vector<8x256xf32>
    %214 = arith.mulf %212, %213 : vector<8x256xf32>
    %215 = vector.broadcast %29 : vector<8x1xf32> to vector<8x256xf32>
    %216 = arith.addf %214, %215 : vector<8x256xf32>
    %cst_80 = arith.constant 2.000000e+01 : f32
    %217 = vector.broadcast %cst_80 : f32 to vector<8x256xf32>
    %218 = arith.minimumf %216, %217 : vector<8x256xf32>
    %219 = math.exp %218 : vector<8x256xf32>
    %cst_81 = arith.constant 2.000000e+00 : f32
    %220 = vector.broadcast %cst_81 : f32 to vector<8x256xf32>
    %221 = arith.addf %219, %220 : vector<8x256xf32>
    %222 = arith.mulf %219, %221 : vector<8x256xf32>
    %cst_82 = arith.constant 2.000000e+00 : f32
    %223 = vector.broadcast %cst_82 : f32 to vector<8x256xf32>
    %224 = arith.addf %222, %223 : vector<8x256xf32>
    %225 = arith.divf %222, %224 : vector<8x256xf32>
    %cst_83 = arith.constant 2.000000e+01 : f32
    %226 = vector.broadcast %cst_83 : f32 to vector<8x256xf32>
    %227 = arith.cmpf ogt, %216, %226 : vector<8x256xf32>
    %228 = arith.mulf %216, %225 : vector<8x256xf32>
    %229 = arith.select %227, %216, %228 : vector<8x256xi1>, vector<8x256xf32>
    %c0_84 = arith.constant 0 : index
    %c0_85 = arith.constant 0 : index
    %230 = vector.load %arg6[%c0_84, %c0_85] : memref<8x4xf32, #tpu.memory_space<vmem>>, vector<8x4xf32>
    %cst_86 = arith.constant dense<0.000000e+00> : vector<8x256xf32>
    %231 = tpu.matmul %230, %1, %cst_86 {dimension_numbers = #tpu.dot_dimension_numbers<[1], [0], [0], [1], [0, 0, 1, 1], [], []>} : vector<8x4xf32>, vector<4x256xf32>, vector<8x256xf32> -> vector<8x256xf32>
    %232 = vector.broadcast %30 : vector<8x1xf32> to vector<8x256xf32>
    %233 = arith.addf %231, %232 : vector<8x256xf32>
    %234 = arith.addf %229, %233 : vector<8x256xf32>
    %c0_87 = arith.constant 0 : index
    %c0_88 = arith.constant 0 : index
    %c0_89 = arith.constant 0 : index
    %235 = vector.load %arg8[%c0_87, %c0_88, %c0_89] : memref<1x8x256xf32, #tpu.memory_space<vmem>>, vector<1x8x256xf32>
    %236 = vector.shape_cast %235 : vector<1x8x256xf32> to vector<8x256xf32>
    %237 = vector.shape_cast %234 : vector<8x256xf32> to vector<1x8x256xf32>
    tpu.vector_store %arg8[%c0_87, %c0_88, %c0_89], %237 {strides = array<i32>} : memref<1x8x256xf32, #tpu.memory_space<vmem>>, vector<1x8x256xf32>,
    return
  }
  func.func @transform_0(%arg0: i32) -> (i32, i32, i32) {
    %c0_i32 = arith.constant 0 : i32
    %c0_i32_0 = arith.constant 0 : i32
    %c0_i32_1 = arith.constant 0 : i32
    return %arg0, %c0_i32, %c0_i32_0 : i32, i32, i32
  }
  func.func @transform_1(%arg0: i32) -> (i32, i32, i32) {
    %c0_i32 = arith.constant 0 : i32
    %c0_i32_0 = arith.constant 0 : i32
    %c0_i32_1 = arith.constant 0 : i32
    return %arg0, %c0_i32, %c0_i32_0 : i32, i32, i32
  }
  func.func @transform_2(%arg0: i32) -> (i32, i32) {
    %c0_i32 = arith.constant 0 : i32
    %c0_i32_0 = arith.constant 0 : i32
    %c0_i32_1 = arith.constant 0 : i32
    return %c0_i32, %c0_i32_0 : i32, i32
  }
  func.func @transform_3(%arg0: i32) -> (i32, i32) {
    %c0_i32 = arith.constant 0 : i32
    %c0_i32_0 = arith.constant 0 : i32
    %c0_i32_1 = arith.constant 0 : i32
    return %c0_i32, %c0_i32_0 : i32, i32
  }
  func.func @transform_4(%arg0: i32) -> (i32, i32) {
    %c0_i32 = arith.constant 0 : i32
    %c0_i32_0 = arith.constant 0 : i32
    %c0_i32_1 = arith.constant 0 : i32
    return %c0_i32, %c0_i32_0 : i32, i32
  }
  func.func @transform_5(%arg0: i32) -> (i32, i32) {
    %c0_i32 = arith.constant 0 : i32
    %c0_i32_0 = arith.constant 0 : i32
    %c0_i32_1 = arith.constant 0 : i32
    return %c0_i32, %c0_i32_0 : i32, i32
  }
  func.func @transform_6(%arg0: i32) -> (i32, i32) {
    %c0_i32 = arith.constant 0 : i32
    %c0_i32_0 = arith.constant 0 : i32
    %c0_i32_1 = arith.constant 0 : i32
    return %c0_i32, %c0_i32_0 : i32, i32
  }
  func.func @transform_7(%arg0: i32) -> (i32, i32, i32) {
    %c0_i32 = arith.constant 0 : i32
    %c0_i32_0 = arith.constant 0 : i32
    %c0_i32_1 = arith.constant 0 : i32
    return %arg0, %c0_i32, %c0_i32_0 : i32, i32, i32
  }
}

</mosaic_0001>

<bundles_post_ra>
// kernel: tpu_custom_call.1
= control target key start
LH: loop header
LB: loop body
LE: loop exit
PB: predicated region body
PF: predicated region fallthrough
CT: control target
= control target key end

     0   :  { %12 = vsyncpa [#allocation5], 0  ;;  %s1796_s0 = inlined_call_operand.hbm [shape: f32[2,4,256], index: 0, kind: input, shape index: {}]   ;;  %s1797_s1 = inlined_call_operand.vmem [shape: f32[2,1,8], index: 1, kind: input, shape index: {}]   ;;  %s1798_s2 = inlined_call_operand.vmem [shape: f32[8,36], index: 2, kind: input, shape index: {}]   ;;  %s1799_s3 = inlined_call_operand.vmem [shape: f32[8,72], index: 3, kind: input, shape index: {}]   ;;  %s1800_s4 = inlined_call_operand.vmem [shape: f32[8,8], index: 4, kind: input, shape index: {}]   ;;  %s1801_s5 = inlined_call_operand.vmem [shape: f32[8,4], index: 5, kind: input, shape index: {}]   ;;  %s1802_s6 = inlined_call_operand.vmem [shape: f32[8,8], index: 6, kind: input, shape index: {}]   ;;  %s1803_s7 = inlined_call_operand.hbm [shape: f32[2,8,256], index: 7, kind: output, shape index: {}]  }
   0x1   :  { %14 = vsyncpa [#allocation5 + $0x1], 0 }
   0x2   :  { %15 = vsyncpa [#allocation6], 0 }
   0x3   :  { %17 = vsyncpa [#allocation6 + $0x1], 0  ;;  %s1414_s24 = smov 0   ;;  %s1416_s25 = smov 0  }
   0x4   :  { %s1418_s26 = smov 0   ;;  %s1420_s27 = smov 0  }
   0x5 LB: > { %s1435_s28 = sadd.s32 4294967295, %s1352_s27   ;;  %s1098_s29 = sadd.s32 4294967294, %s1352_s27   ;;  %s1352_s27 = sphi %s1420_s27, %s1826_s27   ;;  %s1348_s26 = sphi %s1418_s26, %s1825_s26   ;;  %s1344_s25 = sphi %s1416_s25, %s1824_s25   ;;  %s1340_s24 = sphi %s1414_s24, %s1823_s24  }
   0x6   : > { %s1439_s30 = sadd.s32 1, %s1352_s27   ;;  %s30_s8 = sadd.s32 1, %s1348_s26 }
   0x7   : > { %s27_s9 = ssub.s32 %s1352_s27, %s1439_s30  ;;  %p37_p0 = scmp.ne.s32.totalorder %s1348_s26, %s1344_s25 }
   0x8   : > { %p28_p1 = scmp.eq.s32.totalorder %s27_s9, 0  ;;  %p38_p2 = scmp.eq.s32.totalorder %s1352_s27, 0 }
   0x9   : > { %p43_p3 = scmp.ne.s32.totalorder %s1344_s25, %s1340_s24  ;;  %p44_p4 = scmp.eq.s32.totalorder %s1435_s28, 0 }
   0xa   : > { %s1451_s10 = scalar_select %p28_p1, %s1348_s26, %s30_s8  }
   0xb   : > { %p1453_p5 = por %p38_p2, %p37_p0  ;;  %p1457_p6 = por %p44_p4, %p43_p3 }
   0xc   : > { %p198_p7 = scmp.eq.s32.totalorder %s1435_s28, 1  ;;  %p204_p8 = scmp.eq.s32.totalorder %s1098_s29, 1 }
   0xd   : > { %p1157_p10 = scmp.lt.s32.totalorder %s1352_s27, 2  ;;  %s239_s15 = sand.u32 1, %s1348_s26  }
   0xe   : > { %p1464_p11 = por %p198_p7, %p37_p0  ;;  %p1468_p12 = por %p204_p8, %p43_p3 }
   0xf   : > { %s1119_s16 = sshll.u32 %s1352_s27, 7  ;;  %s1101_s17 = sshll.u32 %s239_s15, 3 }
  0x10   : > { %s1807_s13 = scalar_select %p1464_p11, 1, 0 }
  0x11   : > { %s1808_s14 = scalar_select %p1468_p12, 1, 0 }
  0x12   : > { %s1477_s20 = scalar_lea.hbm %s1796_s0, %s1119_s16  ;;  %s243_s21 = scalar_lea.vmem [#allocation4], %s1101_s17 }
  0x13   : > { %s251_s22 = sshll.u32 %s243_s21, 4  ;;  %p1481_p13 = pnand %p1157_p10, %p1453_p5  ;;  %s1485_s22 = int_to_ptr.vmem [resolvable:$true] %s251_s22 }
  0x14   : > { %s240_s29 = scalar_lea.sflag [#allocation5], %s239_s15  ;;  %s1256_s8 = scalar_lea.hbm %s1477_s20, 128 }
  0x15   : > { %p1257_p2 = scmp.ne.s32.totalorder %s1477_s20, %s1256_s8  ;;  %p1258_p3 = pneg %p1481_p13 }
  0x16   : > { %s1261_s16 = scalar_lea.hbm %s1796_s0, 256  ;;  %p1262_p5 = scmp.lt.u32.totalorder %s1477_s20, %s1796_s0 }
  0x17   : > { %p1259_p4 = pnand %p1258_p3, %p1257_p2  ;;  %p1263_p8 = scmp.lt.u32.totalorder %s1261_s16, %s1256_s8 }
  0x18   : > { %p1265_p9 = scmp.lt.u32.totalorder %s1256_s8, %s1477_s20 }
  0x19   : > { %p1260_p7 = pneg %p1259_p4  ;;  %p1264_p10 = por %p1263_p8, %p1262_p5 }
  0x1b   : > { %p1266_p0 = por %p1265_p9, %p1264_p10 }
  0x1d   : > { %p1267_p1 = pnand %p1266_p0, %p1260_p7 }
  0x1f   : > { %1270 = shalt.err (!%p1267_p1)
}
  0x20   : > { %s1271_s15 = scalar_lea.vmem %s1485_s22, 128  ;;  %s1354_s19 = smov [#allocation4]  }
  0x21   : > { %p1272_p2 = scmp.ne.s32.totalorder %s1485_s22, %s1271_s15  ;;  %s1276_s21 = sshll.u32 %s1354_s19, 4  ;;  %s1277_s21 = int_to_ptr.vmem [resolvable:$false] %s1276_s21 }
  0x22   : > { %s1278_s9 = scalar_lea.vmem %s1277_s21, 256  ;;  %p1279_p11 = scmp.lt.s32.totalorder %s1485_s22, %s1277_s21 }
  0x23   : > { %p1274_p4 = pnand %p1272_p2, %p1258_p3  ;;  %p1280_p5 = scmp.lt.s32.totalorder %s1278_s9, %s1271_s15 }
  0x25   : > { %p1275_p12 = pneg %p1274_p4  ;;  %p1281_p8 = por %p1280_p5, %p1279_p11 }
  0x27   : > { %p1282_p9 = pnand %p1281_p8, %p1275_p12 }
  0x29   : > { %1285 = shalt.err (!%p1282_p9)
}
  0x2a   : > { %1152 = dma.hbm_to_vmem [thread:$0]  (!%p1481_p13), %s1477_s20, 128, %s1485_s22, %s240_s29  }
  0x2b   : > { %p1810_p0 = scmp.lt.s32.totalorder %s1352_s27, 3  ;;  %p1811_p1 = scmp.ge.s32.totalorder %s1352_s27, 1 }
  0x2d   : > { %p263_p3 = pnand %p1811_p1, %p1810_p0 }
  0x2e   : > { %s1519_s8 = sand.u32 (!%p263_p3), 1, %s1344_s25  }
  0x2f   : > { %266 = sbr.rel (%p263_p3) target bundleno = 1523 (0x5f3), region = 48  ;;  %s1105_s11 = sshll.u32 (!%p263_p3), %s1519_s8, 3 }
  0x30   : > { %s269_s16 = scalar_lea.sflag (!%p263_p3), [#allocation5], %s1519_s8  ;;  %s272_s17 = scalar_lea.vmem (!%p263_p3), [#allocation4], %s1105_s11 }
  0x36   : > { %1331 = dma.done.wait (%p1457_p6), %s269_s16, 128  }
  0x37   : > { %1333 = vsyncadd (%p1457_p6), %s269_s16, 4294967168  ;;  %v1355_v0 = vmov 0.0   ;;  %v1547_v1 = vld [vmem:[%s272_s17] sm:$0xff]  ;;  %s1356_s12 = smov 17   ;;  %s1357_s20 = smov 1   ;;  %v1364_v4 = vmov 0   ;;  %v310_v6 = vlaneseq }
  0x38   : > { %343 = vst [vmem:[#allocation2] sm:$0xff] %v1355_v0  ;;  %344 = vst [vmem:[#allocation2 + $0x8] sm:$0xff] %v1355_v0  ;;  %569 = vmatprep.mubr.f32.mxu0 %v1355_v0  ;;  %859 = vmatprep.mubr.f32.mxu1 %v1355_v0  ;;  %v1555_v2 = vcombine.high %v1547_v1, %v1547_v1  ;;  %s1358_s22 = smov 15   ;;  %v372_v3 = vcombine.low %v1547_v1, %v1547_v1  ;;  %s1359_s23 = smov 16   ;;  %v1590_v5 = vld [vmem:[%s1802_s6] sm:$0xff]  ;;  %vm369_vm1 = vcmask 1043592  }
  0x39   : > { %345 = vst [vmem:[#allocation2 + $0x10] sm:$0xff] %v1355_v0  ;;  %346 = vst [vmem:[#allocation2 + $0x18] sm:$0xff] %v1355_v0  ;;  %359 = vrot.lane.b32.xlu1 %v1547_v1, %s1356_s12  ;;  %401 = vrot.lane.b32.xlu0 %v1547_v1, %s1357_s20  ;;  %s1360_s29 = smov 127   ;;  %s1361_s18 = smov 113   ;;  %v311_v7 = vand.u32 127, %v310_v6  ;;  %vm417_vm2 = vcmask 1047564  }
  0x3a   : > { %347 = vst [vmem:[#allocation2 + $0x20] sm:$0xff] %v1355_v0  ;;  %348 = vst [vmem:[#allocation2 + $0x28] sm:$0xff] %v1355_v0  ;;  %s1362_s15 = smov 112   ;;  %s1363_s19 = smov 111   ;;  %1208 = vset.pattern.permute.xlu0 %v1364_v4  ;;  %vm363_vm4 = vcmask 138240   ;;  %vm398_vm5 = vcmask 1043576  }
  0x3b   : > { %349 = vst [vmem:[#allocation2 + $0x30] sm:$0xff] %v1355_v0  ;;  %350 = vst [vmem:[#allocation2 + $0x38] sm:$0xff] %v1355_v0  ;;  %v317_v8 = vand.u32 15, %v311_v7  ;;  %v312_v9 = vadd.s32 128, %v311_v7  ;;  %vm392_vm7 = vcmask 121856   ;;  %vm405_vm8 = vcmask 7168  }
  0x3c   : > { %351 = vst [vmem:[#allocation2 + $0x40] sm:$0xf] %v1355_v0  ;;  %352 = vst [vmem:[#allocation2 + $0x48] sm:$0xf] %v1355_v0  ;;  %vm377_vm10 = vcmask 130048   ;;  %vm381_vm11 = vcmask 1047684  }
  0x3d   : > { %659 = vst [vmem:[#allocation3] sm:$0xff] %v1355_v0  ;;  %661 = vst [vmem:[#allocation3 + $0x10] sm:$0xff] %v1355_v0  ;;  %388 = vrot.lane.b32.xlu0 %v1547_v1, %s1358_s22  ;;  %361 = vrot.lane.b32.xlu1 %v1555_v2, %s1356_s12  ;;  %vm1594_vm0 = vcmp.ge.s32.totalorder %v317_v8, 1  ;;  %v324_v11 = vand.u32 15, %v312_v9  ;;  %vm1602_vm3 = vcmp.lt.s32.totalorder %v317_v8, 15  ;;  %vm427_vm12 = vcmask 1039360  }
  0x3e   : > { %663 = vst [vmem:[#allocation3 + $0x20] sm:$0xff] %v1355_v0  ;;  %665 = vst [vmem:[#allocation3 + $0x30] sm:$0xff] %v1355_v0  ;;  %vm440_vm13 = vcmask 1039364   ;;  %vm446_vm14 = vcmask 924672   ;;  %vm453_vm15 = vcmask 920576   ;;  %p306_p6 = scmp.lt.s32.totalorder %s1435_s28, 1 }
  0x3f   : > { %670 = vst [vmem:[#allocation3 + $0x58] sm:$0xff] %v1355_v0  ;;  %672 = vst [vmem:[#allocation3 + $0x68] sm:$0xff] %v1355_v0  ;;  %vm1606_vm6 = vcmp.ge.s32.totalorder %v324_v11, 1  ;;  %vm1615_vm9 = vcmp.lt.s32.totalorder %v324_v11, 15  ;;  %v342_v11 = vld [vmem:[%s1798_s2] sm:$0xff]  ;;  %v1372_v17 = vmov 6  }
  0x40   : > { %674 = vst [vmem:[#allocation3 + $0x78] sm:$0xff] %v1355_v0  ;;  %676 = vst [vmem:[#allocation3 + $0x88] sm:$0xff] %v1355_v0  ;;  %s307_s17 = scalar_select %p306_p6, %s1435_s28, 1 }
  0x41   : > { %421 = vst [vmem:[#allocation2 + $0x20] sm:$0xf] %v1547_v1  ;;  %422 = vst [vmem:[#allocation2 + $0x28] sm:$0xf] %v1555_v2  ;;  %390 = vrot.lane.b32.xlu1 %v1555_v2, %s1358_s22  ;;  %403 = vrot.lane.b32.xlu0 %v1555_v2, %s1357_s20  ;;  %p1820_p12 = scmp.ne.s32.totalorder %s1807_s13, 0  ;;  %s1373_s21 = smov [#allocation7]  }
  0x42   : > { %s308_s11 = scalar_lea.vmem %s1797_s1, %s307_s17 }
  0x45   : > { %375 = vrot.lane.b32.xlu1 %v1547_v1, %s1359_s23  ;;  %373 = vrot.lane.b32.xlu0 %v372_v3, %s1359_s23 }
  0x49   : > { %425 = vrot.lane.b32.xlu1 %v1555_v2, %s1360_s29  ;;  %423 = vrot.lane.b32.xlu0 %v1547_v1, %s1360_s29 }
  0x4d   : > { %444 = vrot.lane.b32.xlu1 %v1555_v2, %s1361_s18  ;;  %442 = vrot.lane.b32.xlu0 %v1547_v1, %s1361_s18 }
  0x51   : > { %457 = vrot.lane.b32.xlu1 %v1547_v1, %s1362_s15  ;;  %455 = vrot.lane.b32.xlu0 %v372_v3, %s1362_s15 }
  0x55   : > { %468 = vrot.lane.b32.xlu1 %v1555_v2, %s1363_s19  ;;  %466 = vrot.lane.b32.xlu0 %v1547_v1, %s1363_s19 }
  0x59   : > { %491 = vperm.xlu0 %1208, %v1590_v5  }
  0xab   : > { %v360_v12 = vpop.permute.xlu1 %359  ;;  %v402_v13 = vpop.permute.xlu0 %401 }
  0xac   : > { %v367_v14 = vsel %vm1594_vm0, %v360_v12, 0.0  ;;  %v409_v15 = vsel %vm1594_vm0, %v402_v13, 0.0 }
  0xad   : > { %370 = vst.msk [vmem:[#allocation2] sm:$0xf] %vm369_vm1, %v367_v14  ;;  %v413_v16 = vrot.slane %v409_v15, 4  ;;  %vm464_vm1 = vcmask 916484  }
  0xaf   : > { %418 = vst.msk [vmem:[#allocation2 + $0x10] sm:$0xf0] %vm417_vm2, %v413_v16  ;;  %v389_v19 = vpop.permute.xlu0 %388  ;;  %v362_v20 = vpop.permute.xlu1 %361  ;;  %vm459_vm2 = vcmask 916480  }
  0xb0   : > { %v396_v21 = vsel %vm1602_vm3, %v389_v19, 0.0  ;;  %v364_v22 = vsel %vm363_vm4, %v360_v12, %v362_v20  ;;  %v1365_v20 = vmov 1  }
  0xb1   : > { %399 = vst.msk [vmem:[#allocation2 + $0x10] sm:$0xf] %vm398_vm5, %v396_v21  ;;  %v368_v23 = vsel %vm1606_vm6, %v364_v22, 0.0  ;;  %vm470_vm5 = vcmask 908288   ;;  %1209 = vset.pattern.permute.xlu1 %v1365_v20  ;;  %v1366_v21 = vmov 2  }
  0xb2   : > { %371 = vst [vmem:[#allocation2 + $0x8] sm:$0xf] %v368_v23  ;;  %1210 = vset.pattern.permute.xlu0 %v1366_v21 }
  0xb3   : > { %v391_v25 = vpop.permute.xlu1 %390  ;;  %v404_v26 = vpop.permute.xlu0 %403 }
  0xb4   : > { %v393_v27 = vsel %vm392_vm7, %v389_v19, %v391_v25  ;;  %v406_v28 = vsel %vm405_vm8, %v402_v13, %v404_v26 }
  0xb5   : > { %v397_v29 = vsel %vm1615_vm9, %v393_v27, 0.0  ;;  %v410_v30 = vsel %vm1606_vm6, %v406_v28, 0.0  ;;  %v641_v27 = vshrl.u32 %v310_v6, 7 }
  0xb6   : > { %400 = vst [vmem:[#allocation2 + $0x18] sm:$0xf] %v397_v29  ;;  %v414_v31 = vrot.slane %v410_v30, 4 }
  0xb7   : > { %v376_v32 = vpop.permute.xlu1 %375  ;;  %v374_v33 = vpop.permute.xlu0 %373  ;;  %v642_v30 = vsub.s32 0, %v641_v27 }
  0xb8   : > { %419 = vst [vmem:[#allocation2 + $0x18] sm:$0xf0] %v414_v31  ;;  %v378_v34 = vsel %vm377_vm10, %v374_v33, %v376_v32  ;;  %382 = vst.msk [vmem:[#allocation2] sm:$0xf0] %vm381_vm11, %v374_v33  ;;  %v481_v51 = vld [vmem:[#allocation2 + $0x10] sm:$0xff]  ;;  %vm477_vm11 = vcmask 904192  }
  0xb9   : > { %383 = vst [vmem:[#allocation2 + $0x8] sm:$0xf0] %v378_v34  ;;  %v638_v33 = vld [vmem:[%s1800_s4] sm:$0xff] }
  0xbb   : > { %v426_v35 = vpop.permute.xlu1 %425  ;;  %v424_v36 = vpop.permute.xlu0 %423 }
  0xbc   : > { %v432_v37 = vsel %vm1615_vm9, %v426_v35, 0.0  ;;  %v428_v38 = vsel %vm427_vm12, %v424_v36, %v426_v35 }
  0xbd   : > { %v436_v39 = vrot.slane %v432_v37, 4  ;;  %v431_v40 = vsel %vm1602_vm3, %v428_v38, 0.0 }
  0xbe   : > { %v435_v41 = vrot.slane %v431_v40, 4 }
  0xbf   : > { %441 = vst.msk [vmem:[#allocation2 + $0x28] sm:$0xf0] %vm440_vm13, %v436_v39  ;;  %v445_v42 = vpop.permute.xlu1 %444  ;;  %v443_v43 = vpop.permute.xlu0 %442  ;;  %v482_v44 = vld [vmem:[#allocation2 + $0x18] sm:$0xff]  ;;  %v479_v45 = vld [vmem:[#allocation2] sm:$0xff]  ;;  %vm498_vm13 = vcmask 1043456  }
  0xc0   : > { %439 = vst [vmem:[#allocation2 + $0x20] sm:$0xf0] %v435_v41  ;;  %v451_v46 = vsel %vm1606_vm6, %v445_v42, 0.0  ;;  %v447_v47 = vsel %vm446_vm14, %v443_v43, %v445_v42  ;;  %v480_v48 = vld [vmem:[#allocation2 + $0x8] sm:$0xff]  ;;  %v1123_v52 = vpack.c.bf16 %v481_v51, %v479_v45  ;;  %v1367_v43 = vmov 7  }
  0xc1   : > { %454 = vst.msk [vmem:[#allocation2 + $0x38] sm:$0xf] %vm453_vm15, %v451_v46  ;;  %v450_v49 = vsel %vm1594_vm0, %v447_v47, 0.0  ;;  %v1121_v50 = vpack.c.bf16 %v482_v44, %v480_v48  ;;  %vm494_vm15 = vcmask 293888  }
  0xc2   : > { %452 = vst [vmem:[#allocation2 + $0x30] sm:$0xf] %v450_v49 }
  0xc3   : > { %v458_v53 = vpop.permute.xlu1 %457  ;;  %1122 = vmatprep.subr.bf16.mxu0 %v1121_v50  ;;  %v456_v54 = vpop.permute.xlu0 %455 }
  0xc4   : > { %465 = vst.msk [vmem:[#allocation2 + $0x38] sm:$0xf0] %vm464_vm1, %v458_v53  ;;  %v460_v55 = vsel %vm459_vm2, %v456_v54, %v458_v53  ;;  %1124 = vmatpush1.bf16.msra.mxu0 %v1123_v52 }
  0xc5   : > { %463 = vst [vmem:[#allocation2 + $0x30] sm:$0xf0] %v460_v55 }
  0xc6   : > { %v484_v61 = vld [vmem:[#allocation2 + $0x28] sm:$0xff] }
  0xc7   : > { %v469_v56 = vpop.permute.xlu1 %468  ;;  %v467_v57 = vpop.permute.xlu0 %466  ;;  %v483_v3 = vld [vmem:[#allocation2 + $0x20] sm:$0xff] }
  0xc8   : > { %v475_v58 = vsel %vm1615_vm9, %v469_v56, 0.0  ;;  %v471_v59 = vsel %vm470_vm5, %v467_v57, %v469_v56 }
  0xc9   : > { %478 = vst.msk [vmem:[#allocation2 + $0x48] sm:$0xf] %vm477_vm11, %v475_v58  ;;  %v474_v60 = vsel %vm1602_vm3, %v471_v59, 0.0  ;;  %vm646_vm11 = vcmask 64512  }
  0xca   : > { %476 = vst [vmem:[#allocation2 + $0x40] sm:$0xf] %v474_v60 }
  0xcb   : > { %v486_v62 = vld [vmem:[#allocation2 + $0x38] sm:$0xff] }
  0xcc   : > { %v1125_v63 = vpack.c.bf16 %v486_v62, %v484_v61  ;;  %v485_v4 = vld [vmem:[#allocation2 + $0x30] sm:$0xff] }
  0xcd   : > { %v1127_v7 = vpack.c.bf16 %v485_v4, %v483_v3 }
  0xce   : > { %1126 = vmatprep.subr.bf16.mxu0 %v1125_v63 }
  0xcf   : > { %1128 = vmatpush1.bf16.msra.mxu0 %v1127_v7 }
  0xd0   : > { %v488_v8 = vld [vmem:[#allocation2 + $0x48] sm:$0xf] }
  0xd1   : > { %1107 = vmatprep.subr.msk.mxu0 %vm498_vm13, %v488_v8  ;;  %v487_v9 = vld [vmem:[#allocation2 + $0x40] sm:$0xf] }
  0xd3   : > { %1108 = vmatpush1.msk.msra.mxu0 %vm498_vm13, %v487_v9 }
  0xd4   : > { %1109 = vmatmul.mubr.msk.f32.vlgmr.msra.gmra.mrb[0].mxu0 %vm494_vm15, %v342_v11  ;;  %1111 = vmatprep.subr.msk.mxu0 %vm498_vm13, %v1555_v2 }
  0xd5   : > { %1112 = vmatpush1.msk.msra.mxu0 %vm498_vm13, %v1547_v1  ;;  %993 = vmatprep.mubr.f32.mxu0 %v1355_v0  ;;  %v626_v0 = vld [vmem:[%s308_s11] sm:$0x1] }
  0xd6   : > { %v627_v1 = vmin.f32 %v626_v0, 20.0  ;;  %vm635_vm1 = vcmp.gt.f32.partialorder %v626_v0, 20.0 }
  0xd8   : > { %v492_v12 = vpop.permute.xlu0 %491  ;;  %v628_v2 = vmul.f32 1.442695, %v627_v1 }
  0xda   : > { %1219 = vpow2.f32 %v628_v2 }
  0xe4   : > { %v1220_v22 = vpop.eup %1219 }
  0xe5   : > { %v630_v23 = vadd.f32 2.0, %v1220_v22 }
  0xe7   : > { %v631_v25 = vmul.f32 %v1220_v22, %v630_v23  ;;  %v1368_v23 = vmov 3  }
  0xe9   : > { %v632_v26 = vadd.f32 2.0, %v631_v25 }
  0xeb   : > { %1221 = vrcp.f32 %v632_v26 }
  0xf5   : > { %v1222_v28 = vpop.eup %1221 }
  0xf6   : > { %v634_v29 = vmul.f32 %v1222_v28, %v631_v25 }
  0xf8   : > { %v636_v31 = vmul.f32 %v634_v29, %v626_v0 }
  0xfa   : > { %v637_v32 = vsel %vm635_vm1, %v626_v0, %v636_v31  ;;  %vm688_vm1 = vcmask 1047688  }
  0xfb   : > { %v643_v34 = vrot.slane %v637_v32, %v642_v30 }
  0xfd   : > { %v645_v35 = vmul.f32 %v643_v34, %v638_v33 }
  0xff   : > { %v647_v36 = vsel %vm646_vm11, %v645_v35, 0.0  ;;  %vm698_vm11 = vcmask 1047680  }
 0x1a7   : > { %v571_v13 = vpop.f32.mrb[0].mxu0 }
 0x1a8   : > { %v572_v14 = vadd.f32 %v571_v13, %v492_v12  ;;  %v573_v15 = vpop.f32.mrb[1].mxu0 }
 0x1a9   : > { %v574_v16 = vadd.f32 %v573_v15, %v492_v12 }
 0x1ab   : > { %v576_v19 = vadd.f32 %v574_v16, %v572_v14 }
 0x1ad   : > { %577 = vadd.xlane.f32.xlu1 %v576_v19 }
 0x1be   : > { %593 = vperm.xlu1 %1209, %v1590_v5  }
 0x1e2   : > { %648 = vadd.xlane.f32.xlu1 %v647_v36 }
 0x23a   : > { %v578_v37 = vpop.xlane.xlu1 %577 }
 0x23b   : > { %v579_v38 = vmul.f32 0.00390625, %v578_v37 }
 0x23d   : > { %v580_v39 = vsub.f32 %v572_v14, %v579_v38  ;;  %v581_v40 = vsub.f32 %v574_v16, %v579_v38 }
 0x23e   : > { %v594_v50 = vpop.permute.xlu1 %593 }
 0x23f   : > { %v582_v6 = vmul.f32 %v580_v39, %v580_v39  ;;  %v583_v41 = vmul.f32 %v581_v40, %v581_v40 }
 0x241   : > { %v584_v42 = vadd.f32 %v583_v41, %v582_v6 }
 0x243   : > { %585 = vadd.xlane.f32.xlu0 %v584_v42 }
 0x259   : > { %599 = vperm.xlu0 %1210, %v1590_v5  }
 0x25d   : > { %1211 = vset.pattern.permute.xlu0 %v1367_v43 }
 0x25e   : > { %653 = vperm.xlu0 %1211, %v1590_v5  }
 0x262   : > { %1212 = vset.pattern.permute.xlu0 %v1368_v23 }
 0x26f   : > { %v649_v15 = vpop.xlane.xlu1 %648 }
 0x2d0   : > { %v586_v44 = vpop.xlane.xlu0 %585 }
 0x2d1   : > { %v587_v45 = vmul.f32 0.00390625, %v586_v44 }
 0x2d3   : > { %v588_v46 = vadd.f32 1e-05, %v587_v45 }
 0x2d5   : > { %1223 = vrsqrt.f32 %v588_v46 }
 0x2d8   : > { %v600_v51 = vpop.permute.xlu0 %599 }
 0x2dd   : > { %v654_v20 = vpop.permute.xlu0 %653 }
 0x2df   : > { %v1224_v47 = vpop.eup %1223 }
 0x2e0   : > { %v590_v48 = vmul.f32 %v1224_v47, %v580_v39  ;;  %v591_v49 = vmul.f32 %v1224_v47, %v581_v40 }
 0x2e2   : > { %v596_v52 = vmul.f32 %v594_v50, %v590_v48  ;;  %v597_v53 = vmul.f32 %v594_v50, %v591_v49 }
 0x2e4   : > { %v602_v54 = vadd.f32 %v600_v51, %v596_v52  ;;  %v603_v55 = vadd.f32 %v600_v51, %v597_v53 }
 0x2e6   : > { %v604_v56 = vmin.f32 %v602_v54, 20.0  ;;  %v605_v57 = vmin.f32 %v603_v55, 20.0  ;;  %vm620_vm13 = vcmp.gt.f32.partialorder %v602_v54, 20.0  ;;  %vm621_vm15 = vcmp.gt.f32.partialorder %v603_v55, 20.0 }
 0x2e8   : > { %v606_v58 = vmul.f32 1.442695, %v604_v56  ;;  %v608_v59 = vmul.f32 1.442695, %v605_v57 }
 0x2ea   : > { %1225 = vpow2.f32 %v606_v58 }
 0x2eb   : > { %1227 = vpow2.f32 %v608_v59 }
 0x2f4   : > { %v1226_v60 = vpop.eup %1225 }
 0x2f5   : > { %v1228_v61 = vpop.eup %1227  ;;  %v610_v62 = vadd.f32 2.0, %v1226_v60 }
 0x2f6   : > { %v611_v63 = vadd.f32 2.0, %v1228_v61 }
 0x2f7   : > { %v612_v3 = vmul.f32 %v1226_v60, %v610_v62 }
 0x2f8   : > { %v613_v4 = vmul.f32 %v1228_v61, %v611_v63 }
 0x2f9   : > { %v614_v7 = vadd.f32 2.0, %v612_v3 }
 0x2fa   : > { %v615_v8 = vadd.f32 2.0, %v613_v4 }
 0x2fb   : > { %1229 = vrcp.f32 %v614_v7 }
 0x2fc   : > { %1231 = vrcp.f32 %v615_v8 }
 0x305   : > { %v1230_v9 = vpop.eup %1229 }
 0x306   : > { %v1232_v11 = vpop.eup %1231  ;;  %v617_v12 = vmul.f32 %v1230_v9, %v612_v3  ;;  %v658_v9 = vld [vmem:[%s1799_s3] sm:$0xff] }
 0x307   : > { %v619_v13 = vmul.f32 %v1232_v11, %v613_v4  ;;  %v916_v11 = vld [vmem:[%s1801_s5] sm:$0xff] }
 0x308   : > { %v622_v14 = vmul.f32 %v617_v12, %v602_v54 }
 0x309   : > { %v623_v16 = vmul.f32 %v619_v13, %v603_v55 }
 0x30a   : > { %v624_v19 = vsel %vm620_vm13, %v602_v54, %v622_v14  ;;  %vm710_vm13 = vcmask 1047672  }
 0x30b   : > { %v625_v21 = vsel %vm621_vm15, %v603_v55, %v623_v16  ;;  %v650_v0 = vadd.f32 %v649_v15, %v624_v19  ;;  %vm1369_vm15 = vmmov 1   ;;  %v1370_v19 = vmov 4  }
 0x30c   : > { %v651_v1 = vadd.f32 %v649_v15, %v625_v21 }
 0x30d   : > { %v1660_v2 = vadd.f32 %v654_v20, %v650_v0 }
 0x30e   : > { %v1662_v22 = vadd.f32 %v654_v20, %v651_v1  ;;  %v1371_v20 = vmov 5  }
 0x30f   : > { %679 = vrot.lane.b32.xlu1 %v1660_v2, %s1356_s12 }
 0x310   : > { %681 = vrot.lane.b32.xlu0 %v1662_v22, %s1356_s12  ;;  %1214 = vset.pattern.permute.xlu1 %v1371_v20  ;;  %s1290_s12 = sshll.u32 %s1373_s21, 4  ;;  %s1291_s12 = int_to_ptr.vmem [resolvable:$false] %s1290_s12 }
 0x313   : > { %703 = vrot.lane.b32.xlu1 %v1662_v22, %s1358_s22 }
 0x314   : > { %691 = vrot.lane.b32.xlu0 %v1660_v2, %s1359_s23 }
 0x317   : > { %715 = vrot.lane.b32.xlu1 %v1662_v22, %s1357_s20 }
 0x318   : > { %693 = vrot.lane.b32.xlu0 %v1662_v22, %s1359_s23 }
 0x31b   : > { %729 = vrot.lane.b32.xlu1 %v1662_v22, %s1360_s29 }
 0x31c   : > { %701 = vrot.lane.b32.xlu0 %v1660_v2, %s1358_s22 }
 0x31f   : > { %740 = vrot.lane.b32.xlu1 %v1662_v22, %s1361_s18 }
 0x320   : > { %713 = vrot.lane.b32.xlu0 %v1660_v2, %s1357_s20  ;;  %s1292_s20 = scalar_lea.vmem %s1291_s12, 512 }
 0x323   : > { %751 = vrot.lane.b32.xlu1 %v1662_v22, %s1362_s15 }
 0x324   : > { %727 = vrot.lane.b32.xlu0 %v1660_v2, %s1360_s29  ;;  %s1106_s29 = sshll.u32 %s1519_s8, 4 }
 0x327   : > { %760 = vrot.lane.b32.xlu1 %v1662_v22, %s1363_s19 }
 0x328   : > { %738 = vrot.lane.b32.xlu0 %v1660_v2, %s1361_s18  ;;  %s1120_s18 = sshll.u32 %s1435_s28, 8  ;;  %s1005_s28 = scalar_lea.sflag [#allocation6], %s1519_s8 }
 0x329   : > { %s1752_s11 = scalar_lea.hbm %s1803_s7, %s1120_s18 }
 0x32c   : > { %749 = vrot.lane.b32.xlu0 %v1660_v2, %s1362_s15  ;;  %s305_s15 = scalar_lea.vmem [#allocation7], %s1106_s29 }
 0x330   : > { %758 = vrot.lane.b32.xlu0 %v1660_v2, %s1363_s19  ;;  %s1019_s19 = sshll.u32 %s305_s15, 4  ;;  %s1754_s19 = int_to_ptr.vmem [resolvable:$true] %s1019_s19 }
 0x331   : > { %s1286_s16 = scalar_lea.vmem %s1754_s19, 256  ;;  %p1293_p10 = scmp.lt.s32.totalorder %s1754_s19, %s1291_s12 }
 0x332   : > { %p1287_p11 = scmp.ne.s32.totalorder %s1754_s19, %s1286_s16  ;;  %p1294_p2 = scmp.lt.s32.totalorder %s1292_s20, %s1286_s16 }
 0x334   : > { %788 = vperm.xlu0 %1212, %v1590_v5   ;;  %p1288_p13 = pnand %p1287_p11, %p1820_p12  ;;  %p1295_p4 = por %p1294_p2, %p1293_p10 }
 0x336   : > { %p1289_p7 = pneg %p1288_p13 }
 0x338   : > { %1213 = vset.pattern.permute.xlu0 %v1370_v19  ;;  %p1296_p5 = pnand %p1295_p4, %p1289_p7 }
 0x381   : > { %v680_v25 = vpop.permute.xlu1 %679 }
 0x382   : > { %v682_v26 = vpop.permute.xlu0 %681  ;;  %v686_v27 = vsel %vm1594_vm0, %v680_v25, 0.0 }
 0x383   : > { %v683_v28 = vsel %vm363_vm4, %v680_v25, %v682_v26  ;;  %689 = vst.msk [vmem:[#allocation3] sm:$0xff] %vm688_vm1, %v686_v27  ;;  %vm1243_vm4 = vmpackc.low %vm1369_vm15, %vm1606_vm6 }
 0x385   : > { %v704_v29 = vpop.permute.xlu1 %703 }
 0x386   : > { %v692_v30 = vpop.permute.xlu0 %691 }
 0x387   : > { %699 = vst.msk [vmem:[#allocation3 + $0x10] sm:$0xff] %vm698_vm11, %v692_v30 }
 0x389   : > { %v716_v31 = vpop.permute.xlu1 %715 }
 0x38a   : > { %v694_v32 = vpop.permute.xlu0 %693  ;;  %v769_v38 = vld [vmem:[#allocation3] sm:$0xff] }
 0x38b   : > { %v695_v33 = vsel %vm377_vm10, %v692_v30, %v694_v32  ;;  %vm722_vm10 = vcmask 1047560  }
 0x38c   : > { %v1244_v37 = vpack.c.bf16 %v695_v33, %v683_v28 }
 0x38d   : > { %v730_v34 = vpop.permute.xlu1 %729 }
 0x38e   : > { %v702_v35 = vpop.permute.xlu0 %701  ;;  %v735_v36 = vsel %vm1615_vm9, %v730_v34, 0.0  ;;  %1245 = vmatprep.subr.msk.bf16.mxu1 %vm1243_vm4, %v1244_v37  ;;  %v771_v39 = vld [vmem:[#allocation3 + $0x10] sm:$0xff] }
 0x38f   : > { %v705_v40 = vsel %vm392_vm7, %v702_v35, %v704_v29  ;;  %v708_v6 = vsel %vm1602_vm3, %v702_v35, 0.0  ;;  %737 = vst.msk [vmem:[#allocation3 + $0x58] sm:$0xff] %vm427_vm12, %v735_v36  ;;  %v1131_v41 = vpack.c.bf16 %v771_v39, %v769_v38  ;;  %vm1246_vm7 = vmpackc.low %vm1606_vm6, %vm1615_vm9 }
 0x390   : > { %711 = vst.msk [vmem:[#allocation3 + $0x20] sm:$0xff] %vm710_vm13, %v708_v6 }
 0x391   : > { %v741_v42 = vpop.permute.xlu1 %740  ;;  %1132 = vmatpush1.bf16.msra.mxu1 %v1131_v41 }
 0x392   : > { %v714_v43 = vpop.permute.xlu0 %713  ;;  %v746_v44 = vsel %vm1606_vm6, %v741_v42, 0.0  ;;  %vm1249_vm6 = vmpackc.low %vm1602_vm3, %vm1369_vm15 }
 0x393   : > { %v717_v45 = vsel %vm405_vm8, %v714_v43, %v716_v31  ;;  %v720_v46 = vsel %vm1594_vm0, %v714_v43, 0.0  ;;  %748 = vst.msk [vmem:[#allocation3 + $0x68] sm:$0xff] %vm446_vm14, %v746_v44  ;;  %vm1252_vm8 = vmpackc.low %vm1369_vm15, %vm1594_vm0 }
 0x394   : > { %723 = vst.msk [vmem:[#allocation3 + $0x30] sm:$0xff] %vm722_vm10, %v720_v46  ;;  %v1247_v50 = vpack.c.bf16 %v717_v45, %v705_v40 }
 0x395   : > { %v752_v47 = vpop.permute.xlu1 %751 }
 0x396   : > { %v728_v48 = vpop.permute.xlu0 %727  ;;  %757 = vst.msk [vmem:[#allocation3 + $0x78] sm:$0xff] %vm459_vm2, %v752_v47  ;;  %1248 = vmatprep.subr.msk.bf16.mxu1 %vm1246_vm7, %v1247_v50  ;;  %v780_v54 = vld [vmem:[#allocation3 + $0x58] sm:$0xff] }
 0x397   : > { %v731_v49 = vsel %vm427_vm12, %v728_v48, %v730_v34  ;;  %v773_v56 = vld [vmem:[#allocation3 + $0x20] sm:$0xff]  ;;  %v1137_v59 = vpack.c.bf16 %v780_v54, %v1662_v22  ;;  %vm921_vm12 = vcmask 31744  }
 0x398   : > { %v1250_v3 = vpack.c.bf16 %v731_v49, %v1660_v2  ;;  %1113 = vmatmul.mubr.msk.f32.vlgmr.msra.gmra.mrb[2].mxu0 %vm921_vm12, %v916_v11 }
 0x399   : > { %v761_v51 = vpop.permute.xlu1 %760 }
 0x39a   : > { %v739_v52 = vpop.permute.xlu0 %738  ;;  %v766_v53 = vsel %vm1615_vm9, %v761_v51, 0.0  ;;  %v782_v62 = vld [vmem:[#allocation3 + $0x68] sm:$0xff]  ;;  %vm791_vm9 = vcmask 588800  }
 0x39b   : > { %v742_v55 = vsel %vm446_vm14, %v739_v52, %v741_v42  ;;  %768 = vst.msk [vmem:[#allocation3 + $0x88] sm:$0xff] %vm470_vm5, %v766_v53  ;;  %v775_v57 = vld [vmem:[#allocation3 + $0x30] sm:$0xff] }
 0x39c   : > { %v1135_v58 = vpack.c.bf16 %v775_v57, %v773_v56 }
 0x39d   : > { %v784_v18 = vld [vmem:[#allocation3 + $0x78] sm:$0xff] }
 0x39e   : > { %v750_v60 = vpop.permute.xlu0 %749  ;;  %1136 = vmatpush1.bf16.msra.mxu1 %v1135_v58  ;;  %v1141_v63 = vpack.c.bf16 %v784_v18, %v782_v62 }
 0x39f   : > { %v753_v61 = vsel %vm459_vm2, %v750_v60, %v752_v47  ;;  %1138 = vmatprep.subr.bf16.mxu1 %v1137_v59 }
 0x3a0   : > { %v1253_v7 = vpack.c.bf16 %v753_v61, %v742_v55 }
 0x3a2   : > { %v759_v24 = vpop.permute.xlu0 %758  ;;  %1251 = vmatpush1.bf16.msk.msra.mxu1 %vm1249_vm6, %v1250_v3  ;;  %v786_v8 = vld [vmem:[#allocation3 + $0x88] sm:$0xff] }
 0x3a3   : > { %v762_v4 = vsel %vm470_vm5, %v759_v24, %v761_v51  ;;  %1142 = vmatprep.subr.bf16.mxu1 %v1141_v63 }
 0x3a6   : > { %1254 = vmatpush1.bf16.msk.msra.mxu1 %vm1252_vm8, %v1253_v7 }
 0x3a7   : > { %811 = vmatprep.subr.mxu1 %v786_v8 }
 0x3aa   : > { %1255 = vmatpush1.msk.msra.mxu1 %vm1602_vm3, %v762_v4 }
 0x3ab   : > { %1110 = vmatmul.mubr.msk.f32.vlgmr.msra.gmra.mrb[0].mxu1 %vm791_vm9, %v658_v9 }
 0x3b3   : > { %v789_v10 = vpop.permute.xlu0 %788 }
 0x46b   : > { %v995_v26 = vpop.f32.mrb[2].mxu0 }
 0x46c   : > { %v997_v27 = vpop.f32.mrb[3].mxu0 }
 0x47e   : > { %v861_v12 = vpop.f32.mrb[0].mxu1 }
 0x47f   : > { %v862_v13 = vadd.f32 %v861_v12, %v789_v10  ;;  %v863_v14 = vpop.f32.mrb[1].mxu1 }
 0x480   : > { %v864_v15 = vadd.f32 %v863_v14, %v789_v10 }
 0x482   : > { %v866_v16 = vadd.f32 %v864_v15, %v862_v13 }
 0x484   : > { %867 = vadd.xlane.f32.xlu1 %v866_v16 }
 0x495   : > { %889 = vperm.xlu1 %1214, %v1590_v5  }
 0x499   : > { %1215 = vset.pattern.permute.xlu1 %v1372_v17 }
 0x49a   : > { %918 = vperm.xlu1 %1215, %v1590_v5  }
 0x511   : > { %v868_v21 = vpop.xlane.xlu1 %867 }
 0x512   : > { %v869_v0 = vmul.f32 0.00390625, %v868_v21 }
 0x514   : > { %v870_v1 = vsub.f32 %v862_v13, %v869_v0  ;;  %v871_v2 = vsub.f32 %v864_v15, %v869_v0 }
 0x515   : > { %v890_v35 = vpop.permute.xlu1 %889 }
 0x516   : > { %v872_v22 = vmul.f32 %v870_v1, %v870_v1  ;;  %v873_v23 = vmul.f32 %v871_v2, %v871_v2 }
 0x518   : > { %v874_v25 = vadd.f32 %v873_v23, %v872_v22 }
 0x519   : > { %v919_v50 = vpop.permute.xlu1 %918 }
 0x51a   : > { %875 = vadd.xlane.f32.xlu0 %v874_v25  ;;  %v996_v55 = vadd.f32 %v995_v26, %v919_v50  ;;  %v998_v57 = vadd.f32 %v997_v27, %v919_v50 }
 0x530   : > { %883 = vperm.xlu0 %1213, %v1590_v5  }
 0x534   : > { %1216 = vset.pattern.permute.xlu0 %v1372_v17 }
 0x5a7   : > { %v876_v28 = vpop.xlane.xlu0 %875 }
 0x5a8   : > { %v877_v29 = vmul.f32 0.00390625, %v876_v28 }
 0x5aa   : > { %v878_v30 = vadd.f32 1e-05, %v877_v29 }
 0x5ac   : > { %1233 = vrsqrt.f32 %v878_v30 }
 0x5af   : > { %v884_v32 = vpop.permute.xlu0 %883 }
 0x5b6   : > { %v1234_v31 = vpop.eup %1233 }
 0x5b7   : > { %v880_v33 = vmul.f32 %v1234_v31, %v870_v1  ;;  %v881_v34 = vmul.f32 %v1234_v31, %v871_v2 }
 0x5b9   : > { %v886_v36 = vmul.f32 %v884_v32, %v880_v33  ;;  %v887_v37 = vmul.f32 %v884_v32, %v881_v34 }
 0x5bb   : > { %v892_v38 = vadd.f32 %v890_v35, %v886_v36  ;;  %v893_v39 = vadd.f32 %v890_v35, %v887_v37 }
 0x5bd   : > { %v894_v40 = vmin.f32 %v892_v38, 20.0  ;;  %v895_v6 = vmin.f32 %v893_v39, 20.0  ;;  %vm910_vm0 = vcmp.gt.f32.partialorder %v892_v38, 20.0  ;;  %vm911_vm3 = vcmp.gt.f32.partialorder %v893_v39, 20.0 }
 0x5bf   : > { %v896_v5 = vmul.f32 1.442695, %v894_v40  ;;  %v898_v41 = vmul.f32 1.442695, %v895_v6 }
 0x5c1   : > { %1235 = vpow2.f32 %v896_v5 }
 0x5c2   : > { %1237 = vpow2.f32 %v898_v41 }
 0x5cb   : > { %v1236_v42 = vpop.eup %1235 }
 0x5cc   : > { %v1238_v43 = vpop.eup %1237  ;;  %v900_v44 = vadd.f32 2.0, %v1236_v42 }
 0x5cd   : > { %v901_v45 = vadd.f32 2.0, %v1238_v43 }
 0x5ce   : > { %v902_v46 = vmul.f32 %v1236_v42, %v900_v44 }
 0x5cf   : > { %v903_v47 = vmul.f32 %v1238_v43, %v901_v45 }
 0x5d0   : > { %v904_v48 = vadd.f32 2.0, %v902_v46 }
 0x5d1   : > { %v905_v49 = vadd.f32 2.0, %v903_v47 }
 0x5d2   : > { %1239 = vrcp.f32 %v904_v48 }
 0x5d3   : > { %1241 = vrcp.f32 %v905_v49 }
 0x5dc   : > { %v1240_v51 = vpop.eup %1239 }
 0x5dd   : > { %v1242_v52 = vpop.eup %1241  ;;  %v907_v53 = vmul.f32 %v1240_v51, %v902_v46 }
 0x5de   : > { %v909_v54 = vmul.f32 %v1242_v52, %v903_v47 }
 0x5df   : > { %v912_v56 = vmul.f32 %v907_v53, %v892_v38 }
 0x5e0   : > { %v913_v58 = vmul.f32 %v909_v54, %v893_v39 }
 0x5e1   : > { %v914_v59 = vsel %vm910_vm0, %v892_v38, %v912_v56 }
 0x5e2   : > { %v915_v60 = vsel %vm911_vm3, %v893_v39, %v913_v58  ;;  %v1000_v18 = vadd.f32 %v996_v55, %v914_v59 }
 0x5e3   : > { %v1001_v61 = vadd.f32 %v998_v57, %v915_v60 }
 0x5e4   : > { %1002 = vst [vmem:[%s305_s15] sm:$0xff] %v1000_v18 }
 0x5e5   : > { %1003 = vst [vmem:[%s305_s15 + $0x8] sm:$0xff] %v1001_v61 }
 0x5e6   : > { %1299 = shalt.err (!%p1296_p5)
}
 0x5e7   : > { %s1300_s8 = scalar_lea.hbm %s1752_s11, 256  ;;  %s1304_s29 = scalar_lea.hbm %s1803_s7, 512 }
 0x5e8   : > { %p1301_p8 = scmp.ne.s32.totalorder %s1752_s11, %s1300_s8  ;;  %p1305_p1 = scmp.lt.u32.totalorder %s1752_s11, %s1803_s7 }
 0x5e9   : > { %p1306_p3 = scmp.lt.u32.totalorder %s1304_s29, %s1300_s8  ;;  %p1308_p11 = scmp.lt.u32.totalorder %s1300_s8, %s1752_s11 }
 0x5ea   : > { %p1302_p9 = pnand %p1301_p8, %p1820_p12 }
 0x5eb   : > { %p1307_p6 = por %p1306_p3, %p1305_p1 }
 0x5ec   : > { %p1303_p0 = pneg %p1302_p9 }
 0x5ed   : > { %p1309_p13 = por %p1308_p11, %p1307_p6 }
 0x5ef   : > { %p1310_p7 = pnand %p1309_p13, %p1303_p0 }
 0x5f1   : > { %1313 = shalt.err (!%p1310_p7)
}
 0x5f2   : > { %1147 = dma.vmem_to_hbm [thread:$0]  (%p1820_p12), %s1754_s19, 256, %s1752_s11, %s1005_s28  }
 0x5f3 PF: > { %s1031_s17 = sand.u32 1, %s1340_s24   ;;  %p1821_p10 = scmp.ne.s32.totalorder %s1808_s14, 0 }
 0x5f4   : > { %p1822_p2 = scmp.ge.s32.totalorder %s1352_s27, 2  ;;  %s1032_s9 = scalar_lea.sflag [#allocation6], %s1031_s17 }
 0x5f6   : > { %p1154_p4 = pnand %p1822_p2, %p1821_p10 }
 0x5f8   : > { %1335 = dma.done.wait (!%p1154_p4), %s1032_s9, 256  }
 0x5f9   : > { %1337 = vsyncadd (!%p1154_p4), %s1032_s9, 4294967040  ;;  %p20_p5 = scmp.ge.s32.totalorder %s1439_s30, 4   ;;  %s1823_s24 = smov %s1344_s25 }
 0x5fa   : > { %s1824_s25 = smov %s1348_s26  ;;  %s1825_s26 = smov %s1451_s10 }
 0x5fb   : > { %s1826_s27 = smov %s1439_s30  ;;  %22 = sbr.rel (!%p20_p5) target bundleno = 5 (0x5), region = 96 }
 0x602   :  { %1037 = vsyncpa [#allocation5], 1 }
 0x603   :  { %1039 = vsyncpa [#allocation5 + $0x1], 1 }
 0x604   :  { %1040 = vsyncpa [#allocation6], 1 }
 0x605   :  { %1042 = vsyncpa [#allocation6 + $0x1], 1 }

</bundles_post_ra>
